<compile_context>
chip_gen: v7x
topology: tpu7x:2x2x1
jax: 0.10.0
libtpu: 0.0.40
codegen_flags: <defaults>
</compile_context>

<pallas_src>
import functools

import numpy as np
import jax
import jax.numpy as jnp
from jax import lax
from jax.experimental import pallas as pl
from jax.experimental.pallas import tpu as pltpu


def _conv_block_kernel(z_ref, w_ref, b_ref, mask_ref, out_ref, *,
                       O, KH, KW, OH, OW, Wp, eps):
    # z_ref:    (1, C, Lz)      zero-padded input, rows flattened (row stride Wp)
    # w_ref:    (KH*KW, O, C)   conv weights, one (O, C) slab per tap
    # b_ref:    (O, 1)          conv bias
    # mask_ref: (1, L)          1.0 on the OH*OW valid columns, 0.0 on wrap cols
    # out_ref:  (1, O, L)       L = OH * Wp  (lane-dense spatial axis)
    L = OH * Wp
    P = OH * OW

    z = z_ref[0]                                     # (C, Lz)

    # Conv2d as KH*KW shifted-slice matmuls on the MXU, exact f32 accumulation.
    acc = jnp.zeros((O, L), jnp.float32)
    for i in range(KH):
        for j in range(KW):
            off = i * Wp + j                         # static offset
            x_sl = z[:, off:off + L]                 # (C, L) contiguous lane slice
            w_ij = w_ref[i * KW + j]                 # (O, C)
            acc = acc + jnp.dot(w_ij, x_sl,
                                preferred_element_type=jnp.float32,
                                precision=lax.Precision.HIGHEST)
    acc = acc + b_ref[...]                           # bias, (O,1) broadcast

    # MyInstanceNorm2d over the P valid spatial positions (single-pass stats,
    # unbiased variance like torch.Tensor.std()).
    mask = mask_ref[...]                             # (1, L)
    ym = acc * mask
    s1 = jnp.sum(ym, axis=1, keepdims=True)          # (O, 1)  sum(y)
    s2 = jnp.sum(ym * acc, axis=1, keepdims=True)    # (O, 1)  sum(y^2) (mask 0/1)
    mean = s1 * jnp.float32(1.0 / P)
    var = (s2 - mean * s1) * jnp.float32(1.0 / (P - 1))
    var = jnp.maximum(var, 0.0)
    inv = 1.0 / (jnp.sqrt(var) + jnp.float32(eps))   # exact; only (O,1) elements

    # Normalize + ReLU.  Wrap columns hold garbage; the wrapper slices them off.
    out_ref[0] = jnp.maximum((acc - mean) * inv, 0.0).astype(out_ref.dtype)


def conv2d_block(x, weight, bias, *, stride=1, padding=1, eps=1e-5):
    """Fused ZeroPad2d(padding) -> Conv2d(stride=1) -> MyInstanceNorm2d -> ReLU.

    x: (N, C, H, W) f32; weight: (O, C, KH, KW); bias: (O,).
    Returns (N, O, OH, OW) in NCHW, matching the PyTorch module.
    """
    assert stride == 1, "only the stride=1 configuration of the module is reproduced"
    N, C, H, W = x.shape
    O, Cw, KH, KW = weight.shape
    assert C == Cw
    Hp, Wp = H + 2 * padding, W + 2 * padding
    OH, OW = Hp - KH + 1, Wp - KW + 1
    P = OH * OW
    assert P > 1, "instance norm with a single spatial position is degenerate"
    L = OH * Wp                     # lane-dense spatial axis inside the kernel
    Lz = (Hp + 1) * Wp              # one extra zero row keeps all KH*KW slices in-bounds

    # Zero-pad (plus one extra bottom row) and flatten the rows -> (N, C, Lz).
    xp = jnp.pad(x.astype(jnp.float32),
                 ((0, 0), (0, 0), (padding, padding + 1), (padding, padding)))
    z = xp.reshape(N, C, Lz)

    # Weights -> (KH*KW, O, C): w[i*KW+j, o, c] = weight[o, c, i, j].
    w = weight.astype(jnp.float32).transpose(2, 3, 0, 1).reshape(KH * KW, O, C)
    b = bias.astype(jnp.float32).reshape(O, 1)

    # Constant 0/1 mask over the L columns: column q is valid iff (q mod Wp) < OW.
    mask = jnp.asarray(((np.arange(L) % Wp) < OW).astype(np.float32).reshape(1, L))

    kernel = functools.partial(_conv_block_kernel, O=O, KH=KH, KW=KW,
                               OH=OH, OW=OW, Wp=Wp, eps=eps)

    out = pl.pallas_call(
        kernel,
        out_shape=jax.ShapeDtypeStruct((N, O, L), jnp.float32),
        grid_spec=pltpu.PrefetchScalarGridSpec(
            num_scalar_prefetch=0,
            grid=(N,),
            in_specs=[
                pl.BlockSpec((1, C, Lz), lambda n: (n, 0, 0)),          # per-batch input
                pl.BlockSpec((KH * KW, O, C), lambda n: (0, 0, 0)),     # weights (all)
                pl.BlockSpec((O, 1), lambda n: (0, 0)),                 # bias
                pl.BlockSpec((1, L), lambda n: (0, 0)),                 # valid-column mask
            ],
            out_specs=pl.BlockSpec((1, O, L), lambda n: (n, 0, 0)),
        ),
        compiler_params=pltpu.CompilerParams(
            dimension_semantics=("parallel",)),
    )(z, w, b, mask)                                 # (N, O, L)

    # (N, O, OH, Wp) -> drop the Wp-OW wrap columns; already NCHW (no transpose).
    return out.reshape(N, O, OH, Wp)[:, :, :, :OW]


def _reference(x, weight, bias, *, stride=1, padding=1, eps=1e-5):
    """Pure-JAX reference of the same forward pass (for sanity check)."""
    y = lax.conv_general_dilated(
        x, weight, window_strides=(stride, stride),
        padding=[(padding, padding), (padding, padding)],
        dimension_numbers=("NCHW", "OIHW", "NCHW"),
        precision=lax.Precision.HIGHEST)
    y = y + bias.reshape(1, -1, 1, 1)
    N, O, OH, OW = y.shape
    yf = y.reshape(N, O, OH * OW)
    mean = yf.mean(axis=2, keepdims=True)
    d = yf - mean
    std = jnp.sqrt((d * d).sum(axis=2, keepdims=True) / (OH * OW - 1))
    yf = d / (std + eps)
    return jnp.maximum(yf.reshape(N, O, OH, OW), 0.0)


if __name__ == "__main__":
    key = jax.random.PRNGKey(0)
    kx, kw, kb = jax.random.split(key, 3)

    N, C, H, W = 2, 4, 16, 16
    O, KH, KW = 8, 3, 3

    x = jax.random.normal(kx, (N, C, H, W), dtype=jnp.float32)
    weight = jax.random.normal(kw, (O, C, KH, KW), dtype=jnp.float32) * 0.1
    bias = jax.random.normal(kb, (O,), dtype=jnp.float32) * 0.1

    out = conv2d_block(x, weight, bias, stride=1, padding=1)
    out = jax.block_until_ready(out)

    ref = _reference(x, weight, bias, stride=1, padding=1)
    assert out.shape == (N, O, H, W)
    assert jnp.allclose(out, ref, atol=2e-3, rtol=2e-3), "mismatch vs reference"

    print("KERNEL_OK")
</pallas_src>

<mosaic_0001>
module attributes {stable_mosaic.version = 11 : i64} {
  func.func @_conv_block_kernel(%arg0: i32, %arg1: memref<1x4x342xf32, #tpu.memory_space<vmem>>, %arg2: memref<9x8x4xf32, #tpu.memory_space<vmem>>, %arg3: memref<8x1xf32, #tpu.memory_space<vmem>>, %arg4: memref<1x288xf32, #tpu.memory_space<vmem>>, %arg5: memref<1x8x288xf32, #tpu.memory_space<vmem>>) attributes {dimension_semantics = [#tpu.dimension_semantics<parallel>], iteration_bounds = array<i64: 2>, scalar_prefetch = 0 : i64, scratch_operands = 0 : i64, tpu.core_type = #tpu.core_type<tc>, window_params = [{transform_indices = @transform_0, window_bounds = array<i64: 1, 4, 342>}, {pipeline_mode = #tpu.pipeline_mode<synchronous>, transform_indices = @transform_1, window_bounds = array<i64: 9, 8, 4>}, {pipeline_mode = #tpu.pipeline_mode<synchronous>, transform_indices = @transform_2, window_bounds = array<i64: 8, 1>}, {pipeline_mode = #tpu.pipeline_mode<synchronous>, transform_indices = @transform_3, window_bounds = array<i64: 1, 288>}, {transform_indices = @transform_4, window_bounds = array<i64: 1, 8, 288>}]} {
    %c0 = arith.constant 0 : index
    %c0_0 = arith.constant 0 : index
    %c0_1 = arith.constant 0 : index
    %0 = vector.load %arg1[%c0, %c0_0, %c0_1] : memref<1x4x342xf32, #tpu.memory_space<vmem>>, vector<1x4x342xf32>
    %1 = vector.shape_cast %0 : vector<1x4x342xf32> to vector<4x342xf32>
    %cst = arith.constant 0.000000e+00 : f32
    %2 = vector.broadcast %cst : f32 to vector<8x288xf32>
    %3 = vector.extract_strided_slice %1 {offsets = [0, 0], sizes = [4, 288], strides = [1, 1]} : vector<4x342xf32> to vector<4x288xf32>
    %c0_2 = arith.constant 0 : index
    %c0_3 = arith.constant 0 : index
    %c0_4 = arith.constant 0 : index
    %4 = vector.load %arg2[%c0_2, %c0_3, %c0_4] : memref<9x8x4xf32, #tpu.memory_space<vmem>>, vector<1x8x4xf32>
    %5 = vector.shape_cast %4 : vector<1x8x4xf32> to vector<8x4xf32>
    %cst_5 = arith.constant dense<0.000000e+00> : vector<8x288xf32>
    %6 = tpu.matmul %5, %3, %cst_5 {dimension_numbers = #tpu.dot_dimension_numbers<[1], [0], [0], [1], [0, 0, 1, 1], [], []>, precision = #tpu.contract_precision<fp32>} : vector<8x4xf32>, vector<4x288xf32>, vector<8x288xf32> -> vector<8x288xf32>
    %7 = arith.addf %2, %6 : vector<8x288xf32>
    %8 = vector.extract_strided_slice %1 {offsets = [0, 1], sizes = [4, 288], strides = [1, 1]} : vector<4x342xf32> to vector<4x288xf32>
    %c1 = arith.constant 1 : index
    %c0_6 = arith.constant 0 : index
    %c0_7 = arith.constant 0 : index
    %9 = vector.load %arg2[%c1, %c0_6, %c0_7] : memref<9x8x4xf32, #tpu.memory_space<vmem>>, vector<1x8x4xf32>
    %10 = vector.shape_cast %9 : vector<1x8x4xf32> to vector<8x4xf32>
    %cst_8 = arith.constant dense<0.000000e+00> : vector<8x288xf32>
    %11 = tpu.matmul %10, %8, %cst_8 {dimension_numbers = #tpu.dot_dimension_numbers<[1], [0], [0], [1], [0, 0, 1, 1], [], []>, precision = #tpu.contract_precision<fp32>} : vector<8x4xf32>, vector<4x288xf32>, vector<8x288xf32> -> vector<8x288xf32>
    %12 = arith.addf %7, %11 : vector<8x288xf32>
    %13 = vector.extract_strided_slice %1 {offsets = [0, 2], sizes = [4, 288], strides = [1, 1]} : vector<4x342xf32> to vector<4x288xf32>
    %c2 = arith.constant 2 : index
    %c0_9 = arith.constant 0 : index
    %c0_10 = arith.constant 0 : index
    %14 = vector.load %arg2[%c2, %c0_9, %c0_10] : memref<9x8x4xf32, #tpu.memory_space<vmem>>, vector<1x8x4xf32>
    %15 = vector.shape_cast %14 : vector<1x8x4xf32> to vector<8x4xf32>
    %cst_11 = arith.constant dense<0.000000e+00> : vector<8x288xf32>
    %16 = tpu.matmul %15, %13, %cst_11 {dimension_numbers = #tpu.dot_dimension_numbers<[1], [0], [0], [1], [0, 0, 1, 1], [], []>, precision = #tpu.contract_precision<fp32>} : vector<8x4xf32>, vector<4x288xf32>, vector<8x288xf32> -> vector<8x288xf32>
    %17 = arith.addf %12, %16 : vector<8x288xf32>
    %18 = vector.extract_strided_slice %1 {offsets = [0, 18], sizes = [4, 288], strides = [1, 1]} : vector<4x342xf32> to vector<4x288xf32>
    %c3 = arith.constant 3 : index
    %c0_12 = arith.constant 0 : index
    %c0_13 = arith.constant 0 : index
    %19 = vector.load %arg2[%c3, %c0_12, %c0_13] : memref<9x8x4xf32, #tpu.memory_space<vmem>>, vector<1x8x4xf32>
    %20 = vector.shape_cast %19 : vector<1x8x4xf32> to vector<8x4xf32>
    %cst_14 = arith.constant dense<0.000000e+00> : vector<8x288xf32>
    %21 = tpu.matmul %20, %18, %cst_14 {dimension_numbers = #tpu.dot_dimension_numbers<[1], [0], [0], [1], [0, 0, 1, 1], [], []>, precision = #tpu.contract_precision<fp32>} : vector<8x4xf32>, vector<4x288xf32>, vector<8x288xf32> -> vector<8x288xf32>
    %22 = arith.addf %17, %21 : vector<8x288xf32>
    %23 = vector.extract_strided_slice %1 {offsets = [0, 19], sizes = [4, 288], strides = [1, 1]} : vector<4x342xf32> to vector<4x288xf32>
    %c4 = arith.constant 4 : index
    %c0_15 = arith.constant 0 : index
    %c0_16 = arith.constant 0 : index
    %24 = vector.load %arg2[%c4, %c0_15, %c0_16] : memref<9x8x4xf32, #tpu.memory_space<vmem>>, vector<1x8x4xf32>
    %25 = vector.shape_cast %24 : vector<1x8x4xf32> to vector<8x4xf32>
    %cst_17 = arith.constant dense<0.000000e+00> : vector<8x288xf32>
    %26 = tpu.matmul %25, %23, %cst_17 {dimension_numbers = #tpu.dot_dimension_numbers<[1], [0], [0], [1], [0, 0, 1, 1], [], []>, precision = #tpu.contract_precision<fp32>} : vector<8x4xf32>, vector<4x288xf32>, vector<8x288xf32> -> vector<8x288xf32>
    %27 = arith.addf %22, %26 : vector<8x288xf32>
    %28 = vector.extract_strided_slice %1 {offsets = [0, 20], sizes = [4, 288], strides = [1, 1]} : vector<4x342xf32> to vector<4x288xf32>
    %c5 = arith.constant 5 : index
    %c0_18 = arith.constant 0 : index
    %c0_19 = arith.constant 0 : index
    %29 = vector.load %arg2[%c5, %c0_18, %c0_19] : memref<9x8x4xf32, #tpu.memory_space<vmem>>, vector<1x8x4xf32>
    %30 = vector.shape_cast %29 : vector<1x8x4xf32> to vector<8x4xf32>
    %cst_20 = arith.constant dense<0.000000e+00> : vector<8x288xf32>
    %31 = tpu.matmul %30, %28, %cst_20 {dimension_numbers = #tpu.dot_dimension_numbers<[1], [0], [0], [1], [0, 0, 1, 1], [], []>, precision = #tpu.contract_precision<fp32>} : vector<8x4xf32>, vector<4x288xf32>, vector<8x288xf32> -> vector<8x288xf32>
    %32 = arith.addf %27, %31 : vector<8x288xf32>
    %33 = vector.extract_strided_slice %1 {offsets = [0, 36], sizes = [4, 288], strides = [1, 1]} : vector<4x342xf32> to vector<4x288xf32>
    %c6 = arith.constant 6 : index
    %c0_21 = arith.constant 0 : index
    %c0_22 = arith.constant 0 : index
    %34 = vector.load %arg2[%c6, %c0_21, %c0_22] : memref<9x8x4xf32, #tpu.memory_space<vmem>>, vector<1x8x4xf32>
    %35 = vector.shape_cast %34 : vector<1x8x4xf32> to vector<8x4xf32>
    %cst_23 = arith.constant dense<0.000000e+00> : vector<8x288xf32>
    %36 = tpu.matmul %35, %33, %cst_23 {dimension_numbers = #tpu.dot_dimension_numbers<[1], [0], [0], [1], [0, 0, 1, 1], [], []>, precision = #tpu.contract_precision<fp32>} : vector<8x4xf32>, vector<4x288xf32>, vector<8x288xf32> -> vector<8x288xf32>
    %37 = arith.addf %32, %36 : vector<8x288xf32>
    %38 = vector.extract_strided_slice %1 {offsets = [0, 37], sizes = [4, 288], strides = [1, 1]} : vector<4x342xf32> to vector<4x288xf32>
    %c7 = arith.constant 7 : index
    %c0_24 = arith.constant 0 : index
    %c0_25 = arith.constant 0 : index
    %39 = vector.load %arg2[%c7, %c0_24, %c0_25] : memref<9x8x4xf32, #tpu.memory_space<vmem>>, vector<1x8x4xf32>
    %40 = vector.shape_cast %39 : vector<1x8x4xf32> to vector<8x4xf32>
    %cst_26 = arith.constant dense<0.000000e+00> : vector<8x288xf32>
    %41 = tpu.matmul %40, %38, %cst_26 {dimension_numbers = #tpu.dot_dimension_numbers<[1], [0], [0], [1], [0, 0, 1, 1], [], []>, precision = #tpu.contract_precision<fp32>} : vector<8x4xf32>, vector<4x288xf32>, vector<8x288xf32> -> vector<8x288xf32>
    %42 = arith.addf %37, %41 : vector<8x288xf32>
    %43 = vector.extract_strided_slice %1 {offsets = [0, 38], sizes = [4, 288], strides = [1, 1]} : vector<4x342xf32> to vector<4x288xf32>
    %c8 = arith.constant 8 : index
    %c0_27 = arith.constant 0 : index
    %c0_28 = arith.constant 0 : index
    %44 = vector.load %arg2[%c8, %c0_27, %c0_28] : memref<9x8x4xf32, #tpu.memory_space<vmem>>, vector<1x8x4xf32>
    %45 = vector.shape_cast %44 : vector<1x8x4xf32> to vector<8x4xf32>
    %cst_29 = arith.constant dense<0.000000e+00> : vector<8x288xf32>
    %46 = tpu.matmul %45, %43, %cst_29 {dimension_numbers = #tpu.dot_dimension_numbers<[1], [0], [0], [1], [0, 0, 1, 1], [], []>, precision = #tpu.contract_precision<fp32>} : vector<8x4xf32>, vector<4x288xf32>, vector<8x288xf32> -> vector<8x288xf32>
    %47 = arith.addf %42, %46 : vector<8x288xf32>
    %c0_30 = arith.constant 0 : index
    %c0_31 = arith.constant 0 : index
    %48 = vector.load %arg3[%c0_30, %c0_31] : memref<8x1xf32, #tpu.memory_space<vmem>>, vector<8x1xf32>
    %49 = vector.broadcast %48 : vector<8x1xf32> to vector<8x288xf32>
    %50 = arith.addf %47, %49 : vector<8x288xf32>
    %c0_32 = arith.constant 0 : index
    %c0_33 = arith.constant 0 : index
    %51 = vector.load %arg4[%c0_32, %c0_33] : memref<1x288xf32, #tpu.memory_space<vmem>>, vector<1x288xf32>
    %52 = vector.broadcast %51 : vector<1x288xf32> to vector<8x288xf32>
    %53 = arith.mulf %50, %52 : vector<8x288xf32>
    %cst_34 = arith.constant dense<0.000000e+00> : vector<8xf32>
    %54 = vector.multi_reduction <add>, %53, %cst_34 [1] : vector<8x288xf32> to vector<8xf32>
    %55 = vector.shape_cast %54 : vector<8xf32> to vector<8x1xf32>
    %56 = arith.mulf %53, %50 : vector<8x288xf32>
    %cst_35 = arith.constant dense<0.000000e+00> : vector<8xf32>
    %57 = vector.multi_reduction <add>, %56, %cst_35 [1] : vector<8x288xf32> to vector<8xf32>
    %58 = vector.shape_cast %57 : vector<8xf32> to vector<8x1xf32>
    %cst_36 = arith.constant 3.906250e-03 : f32
    %59 = vector.broadcast %cst_36 : f32 to vector<8x1xf32>
    %60 = arith.mulf %55, %59 : vector<8x1xf32>
    %61 = arith.mulf %60, %55 : vector<8x1xf32>
    %62 = arith.subf %58, %61 : vector<8x1xf32>
    %cst_37 = arith.constant 0.00392156886 : f32
    %63 = vector.broadcast %cst_37 : f32 to vector<8x1xf32>
    %64 = arith.mulf %62, %63 : vector<8x1xf32>
    %cst_38 = arith.constant 0.000000e+00 : f32
    %65 = vector.broadcast %cst_38 : f32 to vector<8x1xf32>
    %66 = arith.maximumf %64, %65 : vector<8x1xf32>
    %67 = math.sqrt %66 : vector<8x1xf32>
    %cst_39 = arith.constant 9.99999974E-6 : f32
    %68 = vector.broadcast %cst_39 : f32 to vector<8x1xf32>
    %69 = arith.addf %67, %68 : vector<8x1xf32>
    %cst_40 = arith.constant 1.000000e+00 : f32
    %70 = vector.broadcast %cst_40 : f32 to vector<8x1xf32>
    %71 = arith.divf %70, %69 : vector<8x1xf32>
    %72 = vector.broadcast %60 : vector<8x1xf32> to vector<8x288xf32>
    %73 = arith.subf %50, %72 : vector<8x288xf32>
    %74 = vector.broadcast %71 : vector<8x1xf32> to vector<8x288xf32>
    %75 = arith.mulf %73, %74 : vector<8x288xf32>
    %cst_41 = arith.constant 0.000000e+00 : f32
    %76 = vector.broadcast %cst_41 : f32 to vector<8x288xf32>
    %77 = arith.maximumf %75, %76 : vector<8x288xf32>
    %c0_42 = arith.constant 0 : index
    %c0_43 = arith.constant 0 : index
    %c0_44 = arith.constant 0 : index
    %78 = vector.load %arg5[%c0_42, %c0_43, %c0_44] : memref<1x8x288xf32, #tpu.memory_space<vmem>>, vector<1x8x288xf32>
    %79 = vector.shape_cast %78 : vector<1x8x288xf32> to vector<8x288xf32>
    %80 = vector.shape_cast %77 : vector<8x288xf32> to vector<1x8x288xf32>
    tpu.vector_store %arg5[%c0_42, %c0_43, %c0_44], %80 {strides = array<i32>} : memref<1x8x288xf32, #tpu.memory_space<vmem>>, vector<1x8x288xf32>,
    return
  }
  func.func @transform_0(%arg0: i32) -> (i32, i32, i32) {
    %c0_i32 = arith.constant 0 : i32
    %c0_i32_0 = arith.constant 0 : i32
    %c0_i32_1 = arith.constant 0 : i32
    return %arg0, %c0_i32, %c0_i32_0 : i32, i32, i32
  }
  func.func @transform_1(%arg0: i32) -> (i32, i32, i32) {
    %c0_i32 = arith.constant 0 : i32
    %c0_i32_0 = arith.constant 0 : i32
    %c0_i32_1 = arith.constant 0 : i32
    %c0_i32_2 = arith.constant 0 : i32
    return %c0_i32, %c0_i32_0, %c0_i32_1 : i32, i32, i32
  }
  func.func @transform_2(%arg0: i32) -> (i32, i32) {
    %c0_i32 = arith.constant 0 : i32
    %c0_i32_0 = arith.constant 0 : i32
    %c0_i32_1 = arith.constant 0 : i32
    return %c0_i32, %c0_i32_0 : i32, i32
  }
  func.func @transform_3(%arg0: i32) -> (i32, i32) {
    %c0_i32 = arith.constant 0 : i32
    %c0_i32_0 = arith.constant 0 : i32
    %c0_i32_1 = arith.constant 0 : i32
    return %c0_i32, %c0_i32_0 : i32, i32
  }
  func.func @transform_4(%arg0: i32) -> (i32, i32, i32) {
    %c0_i32 = arith.constant 0 : i32
    %c0_i32_0 = arith.constant 0 : i32
    %c0_i32_1 = arith.constant 0 : i32
    return %arg0, %c0_i32, %c0_i32_0 : i32, i32, i32
  }
}

</mosaic_0001>

<bundles_post_ra>
// kernel: tpu_custom_call.1
= control target key start
LH: loop header
LB: loop body
LE: loop exit
PB: predicated region body
PF: predicated region fallthrough
CT: control target
= control target key end

     0   :  { %9 = vsyncpa [#allocation3], 0  ;;  %s10385_s0 = inlined_call_operand.vmem [shape: f32[2,4,342], index: 0, kind: input, shape index: {}]   ;;  %s10386_s1 = inlined_call_operand.vmem [shape: f32[9,8,4], index: 1, kind: input, shape index: {}]   ;;  %s10387_s2 = inlined_call_operand.vmem [shape: f32[8,1], index: 2, kind: input, shape index: {}]   ;;  %s10388_s3 = inlined_call_operand.vmem [shape: f32[1,288], index: 3, kind: input, shape index: {}]   ;;  %s10389_s4 = inlined_call_operand.hbm [shape: f32[2,8,288], index: 4, kind: output, shape index: {}]  }
   0x1   :  { %11 = vsyncpa [#allocation3 + $0x1], 0  ;;  %s9397_s15 = smov 0   ;;  %s9399_s16 = smov 0  }
   0x2   :  { %s9401_s17 = smov 0   ;;  %s9403_s18 = smov 0  }
   0x3 LB: > { %s9418_s19 = sadd.s32 4294967295, %s9358_s18   ;;  %s8737_s20 = sadd.s32 4294967294, %s9358_s18   ;;  %s9358_s18 = sphi %s9403_s18, %s10395_s18   ;;  %s9354_s17 = sphi %s9401_s17, %s10394_s17   ;;  %s9350_s16 = sphi %s9399_s16, %s10393_s16   ;;  %s9346_s15 = sphi %s9397_s15, %s10392_s15  }
   0x4   : > { %s9422_s21 = sadd.s32 1, %s9358_s18   ;;  %s113_s22 = sadd.s32 1, %s9354_s17 }
   0x5   : > { %s110_s23 = ssub.s32 %s9358_s18, %s9422_s21  ;;  %p123_p0 = scmp.ne.s32.totalorder %s9354_s17, %s9350_s16 }
   0x6   : > { %p111_p1 = scmp.eq.s32.totalorder %s110_s23, 0  ;;  %p124_p2 = scmp.eq.s32.totalorder %s9418_s19, 1 }
   0x7   : > { %p129_p3 = scmp.ne.s32.totalorder %s9350_s16, %s9346_s15  ;;  %p130_p4 = scmp.eq.s32.totalorder %s8737_s20, 1 }
   0x8   : > { %s9433_s24 = scalar_select %p111_p1, %s9354_s17, %s113_s22  }
   0x9   : > { %p9435_p5 = por %p124_p2, %p123_p0  ;;  %p9439_p6 = por %p130_p4, %p129_p3 }
   0xa   : > { %p8740_p7 = scmp.ge.s32.totalorder %s9358_s18, 1  ;;  %p165_p8 = scmp.lt.s32.totalorder %s9358_s18, 3 }
   0xc   : > { %p166_p9 = pnand %p8740_p7, %p165_p8 }
   0xd   : > { %p191_p10 = scmp.lt.s32.totalorder (!%p166_p9), %s9418_s19, 1  ;;  %v9360_v0 = vmov (!%p166_p9), 0.0   ;;  %s9361_s6 = smov (!%p166_p9), 127   ;;  %vm9362_vm0 = vmmov (!%p166_p9), 0   ;;  %v8742_v4 = vld [vmem:[%s10386_s1 + $0x8] sm:$0xff] (!%p166_p9)  ;;  %vm213_vm1 = vcmask (!%p166_p9), 31744  }
   0xe   : > { %169 = sbr.rel (%p166_p9) target bundleno = 998 (0x3e6), region = 36  ;;  %8861 = vmatprep.subr.mxu1 (!%p166_p9), %v9360_v0  ;;  %290 = vmatprep.mubr.f32.mxu0 (!%p166_p9), %v9360_v0  ;;  %s9363_s7 = smov (!%p166_p9), 126   ;;  %v215_v5 = vsel (!%p166_p9), %vm213_vm1, %v8742_v4, 0  ;;  %vm210_vm2 = vcmask (!%p166_p9), 1039360   ;;  %vm217_vm3 = vcmask (!%p166_p9), 1043456   ;;  %v198_v37 = vld [vmem:[%s10386_s1] sm:$0xff] (!%p166_p9) }
   0xf   : > { %8863 = vmatprep.mubr.msk.f32.mxu1 (!%p166_p9), %vm9362_vm0, %v9360_v0  ;;  %s9364_s8 = smov (!%p166_p9), 110   ;;  %s9365_s9 = smov (!%p166_p9), 109   ;;  %v9490_v6 = vand.u32 (!%p166_p9), 4294901760, %v215_v5  ;;  %v1136_v43 = vsel (!%p166_p9), %vm213_vm1, %v198_v37, 0  ;;  %vm3931_vm4 = vcmask (!%p166_p9), 891904   ;;  %v8743_v60 = vld [vmem:[%s10386_s1 + $0x10] sm:$0xff] (!%p166_p9) }
  0x10   : > { %s9366_s10 = smov (!%p166_p9), 108   ;;  %s9367_s11 = smov (!%p166_p9), 92   ;;  %v9550_v45 = vand.u32 (!%p166_p9), 4294901760, %v1136_v43  ;;  %v2067_v63 = vsel (!%p166_p9), %vm213_vm1, %v8743_v60, 0  ;;  %vm4865_vm5 = vcmask (!%p166_p9), 883712   ;;  %vm5799_vm6 = vcmask (!%p166_p9), 752640  }
  0x11   : > { %s9368_s12 = smov (!%p166_p9), 91   ;;  %s9369_s13 = smov (!%p166_p9), 90   ;;  %v9493_v7 = vsub.f32 (!%p166_p9), %v215_v5, %v9490_v6  ;;  %v9627_v5 = vand.u32 (!%p166_p9), 4294901760, %v2067_v63  ;;  %vm2063_vm7 = vcmask (!%p166_p9), 1031168   ;;  %vm6733_vm8 = vcmask (!%p166_p9), 744448  }
  0x12   : > { %v9572_v51 = vsub.f32 (!%p166_p9), %v1136_v43, %v9550_v45  ;;  %vm2997_vm9 = vcmask (!%p166_p9), 900096   ;;  %vm7667_vm10 = vcmask (!%p166_p9), 736256   ;;  %vm8623_vm11 = vcmask (!%p166_p9), 261120   ;;  %s9239_s30 = smul.u32 (!%p166_p9), 384, %s9418_s19 }
  0x13   : > { %v9496_v9 = vand.u32 (!%p166_p9), 4294901760, %v9493_v7 }
  0x14   : > { %v9581_v53 = vand.u32 (!%p166_p9), 4294901760, %v9572_v51 }
  0x15   : > { %s192_s27 = scalar_select %p191_p10, %s9418_s19, 1  ;;  %v294_v15 = vsub.f32 %v9493_v7, %v9496_v9 }
  0x16   : > { %v1214_v56 = vsub.f32 %v9572_v51, %v9581_v53 }
  0x17   : > { %s9238_s28 = smul.u32 12, %s192_s27  ;;  %v295_v23 = vand.u32 4294901760, %v294_v15 }
  0x18   : > { %v1215_v59 = vand.u32 4294901760, %v1214_v56 }
  0x19   : > { %s195_s5 = scalar_lea.vmem %s10385_s0, %s9238_s28  ;;  %s188_s28 = sand.u32 1, %s9350_s16  }
  0x1a   : > { %v9452_v1 = vld [vmem:[%s195_s5] sm:$0xff]  ;;  %v9462_v3 = vld [vmem:[%s195_s5 + $0x8] sm:$0xf]  ;;  %s9237_s29 = smul.u32 24, %s188_s28  ;;  %s8664_s19 = scalar_lea.sflag [#allocation3], %s188_s28 }
  0x1b   : > { %204 = vrot.lane.b32.xlu1 %v9452_v1, %s9361_s6  ;;  %v9457_v2 = vcombine.high %v9452_v1, %v9452_v1  ;;  %v1142_v40 = vsel %vm217_vm3, %v9462_v3, 0  ;;  %v1138_v61 = vsel %vm217_vm3, %v9452_v1, 0 }
  0x1c   : > { %v9546_v44 = vand.u32 4294901760, %v1142_v40  ;;  %s190_s5 = scalar_lea.vmem [#allocation2], %s9237_s29 }
  0x1d   : > { %206 = vrot.lane.b32.xlu0 %v9457_v2, %s9361_s6  ;;  %v1140_v54 = vsel %vm217_vm3, %v9457_v2, 0 }
  0x1e   : > { %v9567_v50 = vsub.f32 %v1142_v40, %v9546_v44  ;;  %v9597_v57 = vand.u32 4294901760, %v1140_v54 }
  0x1f   : > { %2059 = vrot.lane.b32.xlu1 %v9457_v2, %s9363_s7 }
  0x20   : > { %v1688_v52 = vand.u32 4294901760, %v9567_v50  ;;  %v9614_v62 = vsub.f32 %v1140_v54, %v9597_v57 }
  0x21   : > { %208 = vrot.lane.b32.xlu0 %v9462_v3, %s9361_s6  ;;  %s8678_s6 = sshll.u32 %s190_s5, 4  ;;  %s10344_s6 = int_to_ptr.vmem [resolvable:$true] %s8678_s6 }
  0x22   : > { %v1689_v55 = vsub.f32 %v9567_v50, %v1688_v52  ;;  %v1224_v4 = vand.u32 4294901760, %v9614_v62 }
  0x23   : > { %2057 = vrot.lane.b32.xlu1 %v9452_v1, %s9363_s7 }
  0x24   : > { %v1690_v58 = vand.u32 4294901760, %v1689_v55 }
  0x25   : > { %2061 = vrot.lane.b32.xlu0 %v9462_v3, %s9363_s7 }
  0x27   : > { %2995 = vrot.lane.b32.xlu1 %v9462_v3, %s9364_s8 }
  0x29   : > { %2993 = vrot.lane.b32.xlu0 %v9457_v2, %s9364_s8 }
  0x2b   : > { %3927 = vrot.lane.b32.xlu1 %v9457_v2, %s9365_s9 }
  0x2d   : > { %2991 = vrot.lane.b32.xlu0 %v9452_v1, %s9364_s8 }
  0x2f   : > { %3925 = vrot.lane.b32.xlu1 %v9452_v1, %s9365_s9 }
  0x31   : > { %3929 = vrot.lane.b32.xlu0 %v9462_v3, %s9365_s9  ;;  %s10342_s9 = scalar_lea.hbm %s10389_s4, %s9239_s30 }
  0x33   : > { %4863 = vrot.lane.b32.xlu1 %v9462_v3, %s9366_s10 }
  0x35   : > { %4861 = vrot.lane.b32.xlu0 %v9457_v2, %s9366_s10 }
  0x37   : > { %5795 = vrot.lane.b32.xlu1 %v9457_v2, %s9367_s11 }
  0x39   : > { %4859 = vrot.lane.b32.xlu0 %v9452_v1, %s9366_s10  ;;  %s9296_s10 = scalar_lea.vmem %s10344_s6, 384 }
  0x3a   : > { %p9297_p11 = scmp.ne.s32.totalorder %s10344_s6, %s9296_s10 }
  0x3b   : > { %5793 = vrot.lane.b32.xlu1 %v9452_v1, %s9367_s11 }
  0x3c   : > { %p9298_p12 = pnand %p9297_p11, %p9435_p5 }
  0x3d   : > { %5797 = vrot.lane.b32.xlu0 %v9462_v3, %s9367_s11  ;;  %s9371_s11 = smov [#allocation2]  }
  0x3e   : > { %p9299_p13 = pneg %p9298_p12 }
  0x3f   : > { %6731 = vrot.lane.b32.xlu1 %v9462_v3, %s9368_s12 }
  0x41   : > { %6729 = vrot.lane.b32.xlu0 %v9457_v2, %s9368_s12 }
  0x43   : > { %7663 = vrot.lane.b32.xlu1 %v9457_v2, %s9369_s13  ;;  %v9620_v2 = vand.u32 4294901760, %v1138_v61 }
  0x45   : > { %6727 = vrot.lane.b32.xlu0 %v9452_v1, %s9368_s12  ;;  %s9300_s12 = sshll.u32 %s9371_s11, 4  ;;  %s9301_s12 = int_to_ptr.vmem [resolvable:$false] %s9300_s12 }
  0x46   : > { %p9303_p0 = scmp.lt.s32.totalorder %s10344_s6, %s9301_s12 }
  0x47   : > { %7661 = vrot.lane.b32.xlu1 %v9452_v1, %s9369_s13 }
  0x49   : > { %7665 = vrot.lane.b32.xlu0 %v9462_v3, %s9369_s13  ;;  %s9302_s13 = scalar_lea.vmem %s9301_s12, 768 }
  0x4a   : > { %p9304_p1 = scmp.lt.s32.totalorder %s9302_s13, %s9296_s10 }
  0x4c   : > { %p9305_p2 = por %p9304_p1, %p9303_p0 }
  0x4e   : > { %p9306_p3 = pnand %p9305_p2, %p9299_p13 }
  0x8d   : > { %v205_v8 = vpop.permute.xlu1 %204 }
  0x8f   : > { %v207_v10 = vpop.permute.xlu0 %206 }
  0x90   : > { %v211_v11 = vsel %vm210_vm2, %v205_v8, %v207_v10  ;;  %v9636_v8 = vsub.f32 %v1138_v61, %v9620_v2 }
  0x91   : > { %v218_v12 = vsel %vm217_vm3, %v211_v11, 0  ;;  %v9499_v13 = vpop.permute.xlu1 %2059 }
  0x92   : > { %v9501_v14 = vand.u32 4294901760, %v218_v12 }
  0x93   : > { %v209_v16 = vpop.permute.xlu0 %208 }
  0x94   : > { %v9506_v17 = vsub.f32 %v218_v12, %v9501_v14  ;;  %v212_v18 = vsel %vm210_vm2, %v207_v10, %v209_v16  ;;  %v222_v19 = vsel %vm217_vm3, %v209_v16, 0  ;;  %v9649_v12 = vsub.f32 %v2067_v63, %v9627_v5 }
  0x95   : > { %v220_v20 = vsel %vm217_vm3, %v212_v18, 0  ;;  %v9510_v21 = vand.u32 4294901760, %v222_v19  ;;  %v9519_v27 = vpop.permute.xlu1 %2057 }
  0x96   : > { %v9512_v22 = vand.u32 4294901760, %v220_v20  ;;  %v310_v24 = vand.u32 4294901760, %v9506_v17  ;;  %v2064_v54 = vsel %vm2063_vm7, %v9519_v27, %v9499_v13 }
  0x97   : > { %v767_v25 = vsub.f32 %v222_v19, %v9510_v21  ;;  %8862 = vmatpush3.msra.mxu1 %v9510_v21  ;;  %v9517_v26 = vpop.permute.xlu0 %2061  ;;  %v9666_v19 = vand.u32 4294901760, %v9649_v12  ;;  %v2069_v27 = vsel %vm217_vm3, %v2064_v54, 0 }
  0x98   : > { %v303_v28 = vsub.f32 %v220_v20, %v9512_v22  ;;  %225 = vmatprep.subr.mxu0 %v9512_v22  ;;  %8864 = vmatmul.mubr.f32.vlgmr.msra.gmra.mrb[0].mxu1 %v295_v23  ;;  %v311_v32 = vsub.f32 %v9506_v17, %v310_v24  ;;  %v2073_v1 = vsel %vm217_vm3, %v9517_v26, 0 }
  0x99   : > { %v768_v29 = vand.u32 4294901760, %v767_v25  ;;  %227 = vmatpush1.msra.mxu0 %v9501_v14  ;;  %8866 = vmatprep.subr.mxu1 %v9360_v0  ;;  %v9531_v33 = vpop.permute.xlu1 %2995 }
  0x9a   : > { %296 = vmatmul.mubr.f32.vlgmr.msra.gmra.mrb[0].mxu0 %v295_v23  ;;  %8868 = vmatprep.mubr.msk.f32.mxu1 %vm9362_vm0, %v9360_v0  ;;  %v304_v30 = vand.u32 4294901760, %v303_v28  ;;  %v312_v39 = vand.u32 4294901760, %v311_v32 }
  0x9b   : > { %v769_v31 = vsub.f32 %v767_v25, %v768_v29  ;;  %376 = vmatprep.mubr.f32.mxu0 %v9360_v0  ;;  %v9533_v34 = vpop.permute.xlu0 %2993 }
  0x9c   : > { %v305_v35 = vsub.f32 %v303_v28, %v304_v30 }
  0x9d   : > { %v770_v36 = vand.u32 4294901760, %v769_v31  ;;  %v3928_v42 = vpop.permute.xlu1 %3927 }
  0x9e   : > { %v306_v38 = vand.u32 4294901760, %v305_v35 }
  0x9f   : > { %8867 = vmatpush3.msra.mxu1 %v770_v36  ;;  %v9540_v41 = vpop.permute.xlu0 %2991 }
  0xa0   : > { %307 = vmatprep.subr.mxu0 %v306_v38  ;;  %8869 = vmatmul.mubr.f32.vlgmr.msra.gmra.mrb[2].mxu1 %v9490_v6 }
  0xa1   : > { %8871 = vmatprep.subr.mxu1 %v9360_v0  ;;  %313 = vmatpush1.msra.mxu0 %v312_v39  ;;  %v3926_v47 = vpop.permute.xlu1 %3925 }
  0xa2   : > { %8872 = vmatpush3.msra.mxu1 %v767_v25  ;;  %378 = vmatmul.mubr.f32.vlgmr.msra.gmra.mrb[0].mxu0 %v9490_v6  ;;  %v9559_v49 = vsel %vm3931_vm4, %v3926_v47, %v3928_v42 }
  0xa3   : > { %386 = vmatprep.subr.mxu0 %v303_v28  ;;  %8873 = vmatprep.mubr.msk.f32.mxu1 %vm9362_vm0, %v9360_v0  ;;  %v9552_v46 = vpop.permute.xlu0 %3929  ;;  %v8744_v28 = vld [vmem:[%s10386_s1 + $0x18] sm:$0xff] }
  0xa4   : > { %389 = vmatpush1.msra.mxu0 %v9506_v17  ;;  %8876 = vmatprep.subr.mxu1 %v9360_v0  ;;  %v9557_v48 = vsel %vm3931_vm4, %v3928_v42, %v9552_v46  ;;  %v1230_v17 = vand.u32 4294901760, %v9636_v8 }
  0xa5   : > { %462 = vmatprep.subr.mxu0 %v9512_v22  ;;  %8874 = vmatmul.mubr.f32.vlgmr.msra.gmra.mrb[4].mxu1 %v9493_v7  ;;  %v9644_v10 = vpop.permute.xlu1 %4863 }
  0xa6   : > { %8877 = vmatpush3.msra.mxu1 %v9510_v21  ;;  %8878 = vmatprep.mubr.msk.f32.mxu1 %vm9362_vm0, %v9360_v0 }
  0xa7   : > { %8881 = vmatprep.subr.mxu1 %v9360_v0  ;;  %452 = vmatprep.mubr.f32.mxu0 %v9360_v0  ;;  %v4862_v3 = vpop.permute.xlu0 %4861 }
  0xa9   : > { %8879 = vmatmul.mubr.f32.vlgmr.msra.gmra.mrb[6].mxu1 %v9496_v9  ;;  %v5796_v31 = vpop.permute.xlu1 %5795 }
  0xaa   : > { %8882 = vmatpush3.msra.mxu1 %v768_v29  ;;  %455 = vmatmul.mubr.f32.vlgmr.msra.gmra.mrb[0].mxu0 %v9493_v7  ;;  %v9631_v7 = vand.u32 4294901760, %v2073_v1  ;;  %v3001_v29 = vsel %vm213_vm1, %v8744_v28, 0 }
  0xab   : > { %464 = vmatpush1.msra.mxu0 %v9501_v14  ;;  %8883 = vmatprep.mubr.msk.f32.mxu1 %vm9362_vm0, %v9360_v0  ;;  %v4860_v11 = vpop.permute.xlu0 %4859  ;;  %v9708_v32 = vand.u32 4294901760, %v3001_v29 }
  0xac   : > { %540 = vmatprep.subr.mxu0 %v304_v30  ;;  %8886 = vmatprep.subr.mxu1 %v9360_v0  ;;  %v9654_v15 = vsel %vm4865_vm5, %v4860_v11, %v4862_v3  ;;  %v9660_v16 = vsub.f32 %v2073_v1, %v9631_v7  ;;  %v3007_v30 = vsel %vm217_vm3, %v9531_v33, 0 }
  0xad   : > { %8884 = vmatmul.mubr.f32.vlgmr.msra.gmra.mrb[8].mxu1 %v9490_v6  ;;  %527 = vmatprep.mubr.f32.mxu0 %v9360_v0  ;;  %v9712_v35 = vand.u32 4294901760, %v3007_v30  ;;  %v5794_v38 = vpop.permute.xlu1 %5793  ;;  %v9729_v40 = vsub.f32 %v3001_v29, %v9708_v32 }
  0xae   : > { %8887 = vmatpush3.msra.mxu1 %v9510_v21  ;;  %8888 = vmatprep.mubr.msk.f32.mxu1 %vm9362_vm0, %v9360_v0  ;;  %v2619_v20 = vand.u32 4294901760, %v9660_v16  ;;  %v1231_v21 = vsub.f32 %v9636_v8, %v1230_v17  ;;  %v9724_v39 = vsel %vm5799_vm6, %v5794_v38, %v5796_v31 }
  0xaf   : > { %8891 = vmatprep.subr.mxu1 %v9360_v0  ;;  %v9714_v36 = vpop.permute.xlu0 %5797  ;;  %v9735_v42 = vsub.f32 %v3007_v30, %v9712_v35  ;;  %v9740_v43 = vand.u32 4294901760, %v9729_v40 }
  0xb0   : > { %v1232_v23 = vand.u32 4294901760, %v1231_v21  ;;  %v9719_v37 = vsel %vm5799_vm6, %v5796_v31, %v9714_v36  ;;  %v2999_v31 = vsel %vm2997_vm9, %v9533_v34, %v9531_v33 }
  0xb1   : > { %8889 = vmatmul.mubr.f32.vlgmr.msra.gmra.mrb[10].mxu1 %v9490_v6  ;;  %v3553_v47 = vand.u32 4294901760, %v9735_v42  ;;  %v3005_v38 = vsel %vm217_vm3, %v2999_v31, 0 }
  0xb2   : > { %531 = vmatmul.mubr.f32.vlgmr.msra.gmra.mrb[0].mxu0 %v9496_v9  ;;  %8892 = vmatpush3.msra.mxu1 %v9546_v44  ;;  %v1225_v9 = vsub.f32 %v9614_v62, %v1224_v4 }
  0xb3   : > { %544 = vmatpush1.msra.mxu0 %v310_v24  ;;  %607 = vmatprep.mubr.f32.mxu0 %v9360_v0  ;;  %v9796_v60 = vpop.permute.xlu0 %6729 }
  0xb4   : > { %616 = vmatprep.subr.mxu0 %v9512_v22  ;;  %8893 = vmatprep.mubr.msk.f32.mxu1 %vm9362_vm0, %v9360_v0  ;;  %v1226_v18 = vand.u32 4294901760, %v1225_v9  ;;  %v2620_v22 = vsub.f32 %v9660_v16, %v2619_v20 }
  0xb5   : > { %8894 = vmatmul.mubr.f32.vlgmr.msra.gmra.mrb[12].mxu1 %v1215_v59  ;;  %8896 = vmatprep.subr.mxu1 %v9360_v0 }
  0xb6   : > { %8897 = vmatpush3.msra.mxu1 %v1690_v58  ;;  %8898 = vmatprep.mubr.msk.f32.mxu1 %vm9362_vm0, %v9360_v0  ;;  %v2621_v25 = vand.u32 4294901760, %v2620_v22  ;;  %v8745_v58 = vld [vmem:[%s10386_s1 + $0x20] sm:$0xff]  ;;  %v8746_v22 = vld [vmem:[%s10386_s1 + $0x28] sm:$0xff] }
  0xb7   : > { %8901 = vmatprep.subr.mxu1 %v9360_v0 }
  0xb9   : > { %8899 = vmatmul.mubr.f32.vlgmr.msra.gmra.mrb[14].mxu1 %v9550_v45 }
  0xba   : > { %609 = vmatmul.mubr.f32.vlgmr.msra.gmra.mrb[0].mxu0 %v9490_v6  ;;  %8902 = vmatpush3.msra.mxu1 %v9567_v50 }
  0xbb   : > { %618 = vmatpush1.msra.mxu0 %v9501_v14  ;;  %681 = vmatprep.mubr.f32.mxu0 %v9360_v0  ;;  %v9652_v14 = vsel %vm4865_vm5, %v4862_v3, %v9644_v10  ;;  %v6728_v3 = vpop.permute.xlu0 %6727 }
  0xbc   : > { %1145 = vmatprep.subr.mxu0 %v9597_v57  ;;  %8903 = vmatprep.mubr.msk.f32.mxu1 %vm9362_vm0, %v9360_v0 }
  0xbd   : > { %8904 = vmatmul.mubr.f32.vlgmr.msra.gmra.mrb[16].mxu1 %v9572_v51  ;;  %8906 = vmatprep.subr.mxu1 %v9360_v0 }
  0xbe   : > { %8907 = vmatpush3.msra.mxu1 %v9546_v44  ;;  %8908 = vmatprep.mubr.msk.f32.mxu1 %vm9362_vm0, %v9360_v0 }
  0xbf   : > { %8911 = vmatprep.subr.mxu1 %v9360_v0 }
  0xc1   : > { %8909 = vmatmul.mubr.f32.vlgmr.msra.gmra.mrb[18].mxu1 %v9581_v53 }
  0xc2   : > { %683 = vmatmul.mubr.f32.vlgmr.msra.gmra.mrb[0].mxu0 %v9490_v6  ;;  %8912 = vmatpush3.msra.mxu1 %v1688_v52  ;;  %v2145_v6 = vsub.f32 %v9649_v12, %v9666_v19 }
  0xc3   : > { %1147 = vmatpush1.msra.mxu0 %v9620_v2  ;;  %1210 = vmatprep.mubr.f32.mxu0 %v9360_v0 }
  0xc4   : > { %1227 = vmatprep.subr.mxu0 %v1226_v18  ;;  %8913 = vmatprep.mubr.msk.f32.mxu1 %vm9362_vm0, %v9360_v0  ;;  %v9689_v24 = vand.u32 4294901760, %v2145_v6 }
  0xc5   : > { %8914 = vmatmul.mubr.f32.vlgmr.msra.gmra.mrb[20].mxu1 %v9550_v45  ;;  %8916 = vmatprep.subr.mxu1 %v9360_v0 }
  0xc6   : > { %8917 = vmatpush3.msra.mxu1 %v9546_v44  ;;  %8918 = vmatprep.mubr.msk.f32.mxu1 %vm9362_vm0, %v9360_v0  ;;  %v2065_v44 = vsel %vm2063_vm7, %v9499_v13, %v9517_v26  ;;  %v3079_v26 = vsub.f32 %v9729_v40, %v9740_v43 }
  0xc7   : > { %8921 = vmatprep.subr.mxu1 %v9360_v0  ;;  %v2071_v50 = vsel %vm217_vm3, %v2065_v44, 0  ;;  %v2998_v44 = vsel %vm2997_vm9, %v9540_v41, %v9533_v34 }
  0xc8   : > { %v9763_v52 = vand.u32 4294901760, %v2071_v50  ;;  %v9769_v55 = vand.u32 4294901760, %v3079_v26  ;;  %v8747_v26 = vld [vmem:[%s10386_s1 + $0x30] sm:$0xff]  ;;  %v3003_v41 = vsel %vm217_vm3, %v2998_v44, 0 }
  0xc9   : > { %8919 = vmatmul.mubr.f32.vlgmr.msra.gmra.mrb[22].mxu1 %v9550_v45 }
  0xca   : > { %1216 = vmatmul.mubr.f32.vlgmr.msra.gmra.mrb[0].mxu0 %v1215_v59  ;;  %8922 = vmatpush3.msra.mxu1 %v9631_v7  ;;  %v9780_v13 = vsub.f32 %v2071_v50, %v9763_v52  ;;  %v9791_v59 = vand.u32 4294901760, %v2069_v27 }
  0xcb   : > { %1233 = vmatpush1.msra.mxu0 %v1232_v23  ;;  %1296 = vmatprep.mubr.f32.mxu0 %v9360_v0  ;;  %v4869_v23 = vsel %vm213_vm1, %v8746_v22, 0 }
  0xcc   : > { %1306 = vmatprep.subr.mxu0 %v9614_v62  ;;  %8923 = vmatprep.mubr.msk.f32.mxu1 %vm9362_vm0, %v9360_v0  ;;  %v2155_v61 = vand.u32 4294901760, %v9780_v13  ;;  %v9807_v1 = vsub.f32 %v2069_v27, %v9791_v59 }
  0xcd   : > { %8924 = vmatmul.mubr.f32.vlgmr.msra.gmra.mrb[24].mxu1 %v9689_v24  ;;  %8926 = vmatprep.subr.mxu1 %v9360_v0 }
  0xce   : > { %8927 = vmatpush3.msra.mxu1 %v2621_v25  ;;  %8928 = vmatprep.mubr.msk.f32.mxu1 %vm9362_vm0, %v9360_v0  ;;  %v9873_v25 = vand.u32 4294901760, %v4869_v23 }
  0xcf   : > { %8931 = vmatprep.subr.mxu1 %v9360_v0 }
  0xd1   : > { %8929 = vmatmul.mubr.f32.vlgmr.msra.gmra.mrb[26].mxu1 %v9627_v5 }
  0xd2   : > { %1298 = vmatmul.mubr.f32.vlgmr.msra.gmra.mrb[0].mxu0 %v9550_v45  ;;  %8932 = vmatpush3.msra.mxu1 %v9660_v16 }
  0xd3   : > { %1309 = vmatpush1.msra.mxu0 %v9636_v8  ;;  %1372 = vmatprep.mubr.f32.mxu0 %v9360_v0  ;;  %v2161_v8 = vand.u32 4294901760, %v9807_v1 }
  0xd4   : > { %1382 = vmatprep.subr.mxu0 %v9597_v57  ;;  %8933 = vmatprep.mubr.msk.f32.mxu1 %vm9362_vm0, %v9360_v0 }
  0xd5   : > { %8934 = vmatmul.mubr.f32.vlgmr.msra.gmra.mrb[28].mxu1 %v9649_v12  ;;  %8936 = vmatprep.subr.mxu1 %v9360_v0 }
  0xd6   : > { %8937 = vmatpush3.msra.mxu1 %v9631_v7  ;;  %8938 = vmatprep.mubr.msk.f32.mxu1 %vm9362_vm0, %v9360_v0 }
  0xd7   : > { %8941 = vmatprep.subr.mxu1 %v9360_v0 }
  0xd9   : > { %8939 = vmatmul.mubr.f32.vlgmr.msra.gmra.mrb[30].mxu1 %v9666_v19 }
  0xda   : > { %1375 = vmatmul.mubr.f32.vlgmr.msra.gmra.mrb[0].mxu0 %v9572_v51  ;;  %8942 = vmatpush3.msra.mxu1 %v2619_v20  ;;  %v3554_v51 = vsub.f32 %v9735_v42, %v3553_v47 }
  0xdb   : > { %1384 = vmatpush1.msra.mxu0 %v9620_v2  ;;  %1447 = vmatprep.mubr.f32.mxu0 %v9360_v0 }
  0xdc   : > { %1460 = vmatprep.subr.mxu0 %v1224_v4  ;;  %8943 = vmatprep.mubr.msk.f32.mxu1 %vm9362_vm0, %v9360_v0  ;;  %v3555_v56 = vand.u32 4294901760, %v3554_v51  ;;  %v9948_v51 = vand.u32 4294901760, %v3003_v41 }
  0xdd   : > { %8946 = vmatprep.subr.mxu1 %v9360_v0  ;;  %8944 = vmatmul.mubr.f32.vlgmr.msra.gmra.mrb[32].mxu1 %v9627_v5 }
  0xde   : > { %8947 = vmatpush3.msra.mxu1 %v9631_v7  ;;  %8948 = vmatprep.mubr.msk.f32.mxu1 %vm9362_vm0, %v9360_v0 }
  0xdf   : > { %8951 = vmatprep.subr.mxu1 %v9360_v0 }
  0xe1   : > { %8949 = vmatmul.mubr.f32.vlgmr.msra.gmra.mrb[34].mxu1 %v9627_v5 }
  0xe2   : > { %1451 = vmatmul.mubr.f32.vlgmr.msra.gmra.mrb[0].mxu0 %v9581_v53  ;;  %8952 = vmatpush3.msra.mxu1 %v9712_v35  ;;  %v3935_v53 = vsel %vm213_vm1, %v8745_v58, 0 }
  0xe3   : > { %1464 = vmatpush1.msra.mxu0 %v1230_v17  ;;  %1527 = vmatprep.mubr.f32.mxu0 %v9360_v0  ;;  %v9800_v62 = vand.u32 4294901760, %v3935_v53  ;;  %v2162_v17 = vsub.f32 %v9807_v1, %v2161_v8 }
  0xe4   : > { %1536 = vmatprep.subr.mxu0 %v9597_v57  ;;  %8953 = vmatprep.mubr.msk.f32.mxu1 %vm9362_vm0, %v9360_v0  ;;  %v3941_v57 = vsel %vm217_vm3, %v9552_v46, 0  ;;  %v2156_v46 = vsub.f32 %v9780_v13, %v2155_v61 }
  0xe5   : > { %8954 = vmatmul.mubr.f32.vlgmr.msra.gmra.mrb[36].mxu1 %v9769_v55  ;;  %8956 = vmatprep.subr.mxu1 %v9360_v0  ;;  %v9804_v63 = vand.u32 4294901760, %v3941_v57  ;;  %v9820_v4 = vsub.f32 %v3935_v53, %v9800_v62  ;;  %v2163_v20 = vand.u32 4294901760, %v2162_v17 }
  0xe6   : > { %8957 = vmatpush3.msra.mxu1 %v3555_v56  ;;  %8958 = vmatprep.mubr.msk.f32.mxu1 %vm9362_vm0, %v9360_v0  ;;  %v2157_v9 = vand.u32 4294901760, %v2156_v46 }
  0xe7   : > { %8961 = vmatprep.subr.mxu1 %v9360_v0  ;;  %v4486_v7 = vsub.f32 %v3941_v57, %v9804_v63  ;;  %v9834_v11 = vand.u32 4294901760, %v9820_v4 }
  0xe9   : > { %8959 = vmatmul.mubr.f32.vlgmr.msra.gmra.mrb[38].mxu1 %v9708_v32  ;;  %v4487_v16 = vand.u32 4294901760, %v4486_v7 }
  0xea   : > { %1529 = vmatmul.mubr.f32.vlgmr.msra.gmra.mrb[0].mxu0 %v9550_v45  ;;  %8962 = vmatpush3.msra.mxu1 %v9735_v42  ;;  %v9920_v42 = vand.u32 4294901760, %v3005_v38 }
  0xeb   : > { %1538 = vmatpush1.msra.mxu0 %v9620_v2  ;;  %1601 = vmatprep.mubr.f32.mxu0 %v9360_v0  ;;  %v9824_v2 = vsel %vm6733_vm8, %v6728_v3, %v9796_v60  ;;  %v4488_v18 = vsub.f32 %v4486_v7, %v4487_v16 }
  0xec   : > { %2076 = vmatprep.subr.mxu0 %v9763_v52  ;;  %8963 = vmatprep.mubr.msk.f32.mxu1 %vm9362_vm0, %v9360_v0  ;;  %v9937_v34 = vsub.f32 %v3005_v38, %v9920_v42 }
  0xed   : > { %8964 = vmatmul.mubr.f32.vlgmr.msra.gmra.mrb[40].mxu1 %v9729_v40  ;;  %8966 = vmatprep.subr.mxu1 %v9360_v0  ;;  %v4489_v6 = vand.u32 4294901760, %v4488_v18 }
  0xee   : > { %8967 = vmatpush3.msra.mxu1 %v9712_v35  ;;  %8968 = vmatprep.mubr.msk.f32.mxu1 %vm9362_vm0, %v9360_v0  ;;  %v3089_v54 = vand.u32 4294901760, %v9937_v34 }
  0xef   : > { %8971 = vmatprep.subr.mxu1 %v9360_v0 }
  0xf1   : > { %8969 = vmatmul.mubr.f32.vlgmr.msra.gmra.mrb[42].mxu1 %v9740_v43 }
  0xf2   : > { %1603 = vmatmul.mubr.f32.vlgmr.msra.gmra.mrb[0].mxu0 %v9550_v45  ;;  %8972 = vmatpush3.msra.mxu1 %v3553_v47  ;;  %v4013_v45 = vsub.f32 %v9820_v4, %v9834_v11 }
  0xf3   : > { %2078 = vmatpush1.msra.mxu0 %v9791_v59  ;;  %2141 = vmatprep.mubr.f32.mxu0 %v9360_v0 }
  0xf4   : > { %2158 = vmatprep.subr.mxu0 %v2157_v9  ;;  %8973 = vmatprep.mubr.msk.f32.mxu1 %vm9362_vm0, %v9360_v0  ;;  %v9853_v21 = vand.u32 4294901760, %v4013_v45  ;;  %v8748_v9 = vld [vmem:[%s10386_s1 + $0x38] sm:$0xff] }
  0xf5   : > { %8974 = vmatmul.mubr.f32.vlgmr.msra.gmra.mrb[44].mxu1 %v9708_v32  ;;  %8976 = vmatprep.subr.mxu1 %v9360_v0 }
  0xf6   : > { %8977 = vmatpush3.msra.mxu1 %v9712_v35  ;;  %8978 = vmatprep.mubr.msk.f32.mxu1 %vm9362_vm0, %v9360_v0 }
  0xf7   : > { %8981 = vmatprep.subr.mxu1 %v9360_v0 }
  0xf9   : > { %8979 = vmatmul.mubr.f32.vlgmr.msra.gmra.mrb[46].mxu1 %v9708_v32 }
  0xfa   : > { %2147 = vmatmul.mubr.f32.vlgmr.msra.gmra.mrb[0].mxu0 %v9689_v24  ;;  %8982 = vmatpush3.msra.mxu1 %v9804_v63  ;;  %v4875_v24 = vsel %vm217_vm3, %v9644_v10, 0  ;;  %v9886_v10 = vsub.f32 %v4869_v23, %v9873_v25 }
  0xfb   : > { %2164 = vmatpush1.msra.mxu0 %v2163_v20  ;;  %2227 = vmatprep.mubr.f32.mxu0 %v9360_v0  ;;  %v9876_v28 = vand.u32 4294901760, %v4875_v24 }
  0xfc   : > { %2237 = vmatprep.subr.mxu0 %v9780_v13  ;;  %8983 = vmatprep.mubr.msk.f32.mxu1 %vm9362_vm0, %v9360_v0  ;;  %v9897_v30 = vand.u32 4294901760, %v9886_v10  ;;  %v9962_v13 = vsub.f32 %v3003_v41, %v9948_v51 }
  0xfd   : > { %8984 = vmatmul.mubr.f32.vlgmr.msra.gmra.mrb[48].mxu1 %v9853_v21  ;;  %8986 = vmatprep.subr.mxu1 %v9360_v0  ;;  %v9892_v29 = vsub.f32 %v4875_v24, %v9876_v28  ;;  %v3939_v24 = vsel %vm217_vm3, %v9557_v48, 0 }
  0xfe   : > { %8987 = vmatpush3.msra.mxu1 %v4489_v6  ;;  %8988 = vmatprep.mubr.msk.f32.mxu1 %vm9362_vm0, %v9360_v0  ;;  %v4947_v33 = vsub.f32 %v9886_v10, %v9897_v30 }
  0xff   : > { %8991 = vmatprep.subr.mxu1 %v9360_v0  ;;  %v5421_v35 = vand.u32 4294901760, %v9892_v29 }
 0x100   : > { %v9926_v47 = vand.u32 4294901760, %v4947_v33  ;;  %v3937_v33 = vsel %vm217_vm3, %v9559_v49, 0 }
 0x101   : > { %8989 = vmatmul.mubr.f32.vlgmr.msra.gmra.mrb[50].mxu1 %v9800_v62  ;;  %v10099_v44 = vand.u32 4294901760, %v3937_v33 }
 0x102   : > { %2229 = vmatmul.mubr.f32.vlgmr.msra.gmra.mrb[0].mxu0 %v9627_v5  ;;  %8992 = vmatpush3.msra.mxu1 %v4486_v7 }
 0x103   : > { %2240 = vmatpush1.msra.mxu0 %v9807_v1  ;;  %2303 = vmatprep.mubr.f32.mxu0 %v9360_v0 }
 0x104   : > { %2313 = vmatprep.subr.mxu0 %v9763_v52  ;;  %8993 = vmatprep.mubr.msk.f32.mxu1 %vm9362_vm0, %v9360_v0 }
 0x105   : > { %8994 = vmatmul.mubr.f32.vlgmr.msra.gmra.mrb[52].mxu1 %v9820_v4  ;;  %8996 = vmatprep.subr.mxu1 %v9360_v0 }
 0x106   : > { %8997 = vmatpush3.msra.mxu1 %v9804_v63  ;;  %8998 = vmatprep.mubr.msk.f32.mxu1 %vm9362_vm0, %v9360_v0 }
 0x107   : > { %9001 = vmatprep.subr.mxu1 %v9360_v0 }
 0x109   : > { %8999 = vmatmul.mubr.f32.vlgmr.msra.gmra.mrb[54].mxu1 %v9834_v11 }
 0x10a   : > { %2306 = vmatmul.mubr.f32.vlgmr.msra.gmra.mrb[0].mxu0 %v9649_v12  ;;  %9002 = vmatpush3.msra.mxu1 %v4487_v16  ;;  %v5422_v12 = vsub.f32 %v9892_v29, %v5421_v35  ;;  %v10015_v16 = vpop.permute.xlu1 %6731 }
 0x10b   : > { %2315 = vmatpush1.msra.mxu0 %v9791_v59  ;;  %2378 = vmatprep.mubr.f32.mxu0 %v9360_v0  ;;  %v6743_v17 = vsel %vm217_vm3, %v10015_v16, 0 }
 0x10c   : > { %2391 = vmatprep.subr.mxu0 %v2155_v61  ;;  %9003 = vmatprep.mubr.msk.f32.mxu1 %vm9362_vm0, %v9360_v0  ;;  %v5423_v50 = vand.u32 4294901760, %v5422_v12  ;;  %v10029_v18 = vand.u32 4294901760, %v6743_v17 }
 0x10d   : > { %9004 = vmatmul.mubr.f32.vlgmr.msra.gmra.mrb[56].mxu1 %v9800_v62  ;;  %9006 = vmatprep.subr.mxu1 %v9360_v0 }
 0x10e   : > { %9007 = vmatpush3.msra.mxu1 %v9804_v63  ;;  %9008 = vmatprep.mubr.msk.f32.mxu1 %vm9362_vm0, %v9360_v0  ;;  %v10045_v6 = vsub.f32 %v6743_v17, %v10029_v18 }
 0x10f   : > { %9011 = vmatprep.subr.mxu1 %v9360_v0 }
 0x110   : > { %v7289_v23 = vand.u32 4294901760, %v10045_v6 }
 0x111   : > { %9009 = vmatmul.mubr.f32.vlgmr.msra.gmra.mrb[58].mxu1 %v9800_v62 }
 0x112   : > { %2382 = vmatmul.mubr.f32.vlgmr.msra.gmra.mrb[0].mxu0 %v9666_v19  ;;  %9012 = vmatpush3.msra.mxu1 %v9876_v28  ;;  %v5803_v19 = vsel %vm213_vm1, %v8747_v26, 0 }
 0x113   : > { %2395 = vmatpush1.msra.mxu0 %v2161_v8  ;;  %2458 = vmatprep.mubr.f32.mxu0 %v9360_v0  ;;  %v9955_v56 = vand.u32 4294901760, %v5803_v19 }
 0x114   : > { %2467 = vmatprep.subr.mxu0 %v9763_v52  ;;  %9013 = vmatprep.mubr.msk.f32.mxu1 %vm9362_vm0, %v9360_v0  ;;  %v5809_v52 = vsel %vm217_vm3, %v9714_v36, 0  ;;  %v3090_v36 = vsub.f32 %v9937_v34, %v3089_v54 }
 0x115   : > { %9014 = vmatmul.mubr.f32.vlgmr.msra.gmra.mrb[60].mxu1 %v9926_v47  ;;  %9016 = vmatprep.subr.mxu1 %v9360_v0  ;;  %v9959_v58 = vand.u32 4294901760, %v5809_v52  ;;  %v9975_v27 = vsub.f32 %v5803_v19, %v9955_v56 }
 0x116   : > { %9017 = vmatpush3.msra.mxu1 %v5423_v50  ;;  %9018 = vmatprep.mubr.msk.f32.mxu1 %vm9362_vm0, %v9360_v0  ;;  %v3091_v57 = vand.u32 4294901760, %v3090_v36 }
 0x117   : > { %9021 = vmatprep.subr.mxu1 %v9360_v0  ;;  %v6354_v53 = vsub.f32 %v5809_v52, %v9959_v58  ;;  %v9985_v61 = vand.u32 4294901760, %v9975_v27 }
 0x119   : > { %9019 = vmatmul.mubr.f32.vlgmr.msra.gmra.mrb[62].mxu1 %v9873_v25  ;;  %v6355_v63 = vand.u32 4294901760, %v6354_v53 }
 0x11a   : > { %2460 = vmatmul.mubr.f32.vlgmr.msra.gmra.mrb[0].mxu0 %v9627_v5  ;;  %9022 = vmatpush3.msra.mxu1 %v9892_v29  ;;  %v10071_v29 = vand.u32 4294901760, %v3939_v24 }
 0x11b   : > { %2469 = vmatpush1.msra.mxu0 %v9791_v59  ;;  %2532 = vmatprep.mubr.f32.mxu0 %v9360_v0  ;;  %v3095_v59 = vand.u32 4294901760, %v9962_v13  ;;  %v6356_v46 = vsub.f32 %v6354_v53, %v6355_v63 }
 0x11c   : > { %3010 = vmatprep.subr.mxu0 %v9920_v42  ;;  %9023 = vmatprep.mubr.msk.f32.mxu1 %vm9362_vm0, %v9360_v0  ;;  %v10085_v38 = vsub.f32 %v3939_v24, %v10071_v29 }
 0x11d   : > { %9024 = vmatmul.mubr.f32.vlgmr.msra.gmra.mrb[64].mxu1 %v9886_v10  ;;  %9026 = vmatprep.subr.mxu1 %v9360_v0  ;;  %v3096_v1 = vsub.f32 %v9962_v13, %v3095_v59  ;;  %v6357_v8 = vand.u32 4294901760, %v6356_v46  ;;  %v4871_v46 = vsel %vm217_vm3, %v9654_v15, 0 }
 0x11e   : > { %9027 = vmatpush3.msra.mxu1 %v9876_v28  ;;  %9028 = vmatprep.mubr.msk.f32.mxu1 %vm9362_vm0, %v9360_v0 }
 0x11f   : > { %9031 = vmatprep.subr.mxu1 %v9360_v0  ;;  %v3097_v3 = vand.u32 4294901760, %v3096_v1  ;;  %v9370_v1 = vmov 0  }
 0x120   : > { %9290 = vset.pattern.permute.xlu0 %v9370_v1 }
 0x121   : > { %9029 = vmatmul.mubr.f32.vlgmr.msra.gmra.mrb[66].mxu1 %v9897_v30 }
 0x122   : > { %2534 = vmatmul.mubr.f32.vlgmr.msra.gmra.mrb[0].mxu0 %v9627_v5  ;;  %9032 = vmatpush3.msra.mxu1 %v5421_v35  ;;  %v5881_v5 = vsub.f32 %v9975_v27, %v9985_v61  ;;  %v8749_v35 = vld [vmem:[%s10386_s1 + $0x40] sm:$0xff] }
 0x123   : > { %3012 = vmatpush1.msra.mxu0 %v9948_v51  ;;  %3075 = vmatprep.mubr.f32.mxu0 %v9360_v0  ;;  %v7671_v12 = vsel %vm213_vm1, %v8749_v35, 0 }
 0x124   : > { %3092 = vmatprep.subr.mxu0 %v3091_v57  ;;  %9033 = vmatprep.mubr.msk.f32.mxu1 %vm9362_vm0, %v9360_v0  ;;  %v10004_v7 = vand.u32 4294901760, %v5881_v5  ;;  %v10106_v50 = vand.u32 4294901760, %v7671_v12  ;;  %v4873_v5 = vsel %vm217_vm3, %v9652_v14, 0 }
 0x125   : > { %9034 = vmatmul.mubr.f32.vlgmr.msra.gmra.mrb[68].mxu1 %v9873_v25  ;;  %9036 = vmatprep.subr.mxu1 %v9360_v0 }
 0x126   : > { %9037 = vmatpush3.msra.mxu1 %v9876_v28  ;;  %9038 = vmatprep.mubr.msk.f32.mxu1 %vm9362_vm0, %v9360_v0  ;;  %v7290_v28 = vsub.f32 %v10045_v6, %v7289_v23  ;;  %v10126_v19 = vsub.f32 %v7671_v12, %v10106_v50 }
 0x127   : > { %9041 = vmatprep.subr.mxu1 %v9360_v0 }
 0x128   : > { %v7291_v31 = vand.u32 4294901760, %v7290_v28 }
 0x129   : > { %9039 = vmatmul.mubr.f32.vlgmr.msra.gmra.mrb[70].mxu1 %v9873_v25 }
 0x12a   : > { %3081 = vmatmul.mubr.f32.vlgmr.msra.gmra.mrb[0].mxu0 %v9769_v55  ;;  %9042 = vmatpush3.msra.mxu1 %v9959_v58  ;;  %v6737_v55 = vsel %vm213_vm1, %v8748_v9, 0  ;;  %v10210_v9 = vand.u32 4294901760, %v4871_v46 }
 0x12b   : > { %3098 = vmatpush1.msra.mxu0 %v3097_v3  ;;  %3161 = vmatprep.mubr.f32.mxu0 %v9360_v0  ;;  %v10026_v45 = vand.u32 4294901760, %v6737_v55 }
 0x12c   : > { %3171 = vmatprep.subr.mxu0 %v9937_v34  ;;  %9043 = vmatprep.mubr.msk.f32.mxu1 %vm9362_vm0, %v9360_v0  ;;  %v10113_v34 = vsub.f32 %v3937_v33, %v10099_v44 }
 0x12d   : > { %9044 = vmatmul.mubr.f32.vlgmr.msra.gmra.mrb[72].mxu1 %v10004_v7  ;;  %9046 = vmatprep.subr.mxu1 %v9360_v0  ;;  %v10039_v20 = vsub.f32 %v6737_v55, %v10026_v45 }
 0x12e   : > { %9047 = vmatpush3.msra.mxu1 %v6357_v8  ;;  %9048 = vmatprep.mubr.msk.f32.mxu1 %vm9362_vm0, %v9360_v0  ;;  %v4029_v52 = vand.u32 4294901760, %v10113_v34 }
 0x12f   : > { %9051 = vmatprep.subr.mxu1 %v9360_v0  ;;  %v10050_v22 = vand.u32 4294901760, %v10039_v20 }
 0x130   : > { %v4030_v36 = vsub.f32 %v10113_v34, %v4029_v52 }
 0x131   : > { %9049 = vmatmul.mubr.f32.vlgmr.msra.gmra.mrb[74].mxu1 %v9955_v56 }
 0x132   : > { %3163 = vmatmul.mubr.f32.vlgmr.msra.gmra.mrb[0].mxu0 %v9708_v32  ;;  %9052 = vmatpush3.msra.mxu1 %v6354_v53 }
 0x133   : > { %3174 = vmatpush1.msra.mxu0 %v9962_v13  ;;  %3237 = vmatprep.mubr.f32.mxu0 %v9360_v0 }
 0x134   : > { %3247 = vmatprep.subr.mxu0 %v9920_v42  ;;  %9053 = vmatprep.mubr.msk.f32.mxu1 %vm9362_vm0, %v9360_v0 }
 0x135   : > { %9054 = vmatmul.mubr.f32.vlgmr.msra.gmra.mrb[76].mxu1 %v9975_v27  ;;  %9056 = vmatprep.subr.mxu1 %v9360_v0 }
 0x136   : > { %9057 = vmatpush3.msra.mxu1 %v9959_v58  ;;  %9058 = vmatprep.mubr.msk.f32.mxu1 %vm9362_vm0, %v9360_v0 }
 0x137   : > { %9061 = vmatprep.subr.mxu1 %v9360_v0 }
 0x139   : > { %9059 = vmatmul.mubr.f32.vlgmr.msra.gmra.mrb[78].mxu1 %v9985_v61 }
 0x13a   : > { %3240 = vmatmul.mubr.f32.vlgmr.msra.gmra.mrb[0].mxu0 %v9729_v40  ;;  %9062 = vmatpush3.msra.mxu1 %v6355_v63  ;;  %v6815_v40 = vsub.f32 %v10039_v20, %v10050_v22 }
 0x13b   : > { %3249 = vmatpush1.msra.mxu0 %v9948_v51  ;;  %3312 = vmatprep.mubr.f32.mxu0 %v9360_v0 }
 0x13c   : > { %3325 = vmatprep.subr.mxu0 %v3089_v54  ;;  %9063 = vmatprep.mubr.msk.f32.mxu1 %vm9362_vm0, %v9360_v0  ;;  %v10074_v48 = vand.u32 4294901760, %v6815_v40 }
 0x13d   : > { %9064 = vmatmul.mubr.f32.vlgmr.msra.gmra.mrb[80].mxu1 %v9955_v56  ;;  %9066 = vmatprep.subr.mxu1 %v9360_v0 }
 0x13e   : > { %9067 = vmatpush3.msra.mxu1 %v9959_v58  ;;  %9068 = vmatprep.mubr.msk.f32.mxu1 %vm9362_vm0, %v9360_v0  ;;  %v10136_v58 = vand.u32 4294901760, %v10126_v19 }
 0x13f   : > { %9071 = vmatprep.subr.mxu1 %v9360_v0 }
 0x141   : > { %9069 = vmatmul.mubr.f32.vlgmr.msra.gmra.mrb[82].mxu1 %v9955_v56 }
 0x142   : > { %3316 = vmatmul.mubr.f32.vlgmr.msra.gmra.mrb[0].mxu0 %v9740_v43  ;;  %9072 = vmatpush3.msra.mxu1 %v10029_v18  ;;  %v10092_v43 = vpop.permute.xlu0 %7665 }
 0x143   : > { %3329 = vmatpush1.msra.mxu0 %v3095_v59  ;;  %3392 = vmatprep.mubr.f32.mxu0 %v9360_v0  ;;  %v7677_v49 = vsel %vm217_vm3, %v10092_v43, 0  ;;  %v4031_v59 = vand.u32 4294901760, %v4030_v36 }
 0x144   : > { %3401 = vmatprep.subr.mxu0 %v9920_v42  ;;  %9073 = vmatprep.mubr.msk.f32.mxu1 %vm9362_vm0, %v9360_v0  ;;  %v4023_v42 = vand.u32 4294901760, %v10085_v38  ;;  %v10110_v26 = vand.u32 4294901760, %v7677_v49 }
 0x145   : > { %9074 = vmatmul.mubr.f32.vlgmr.msra.gmra.mrb[84].mxu1 %v10074_v48  ;;  %9076 = vmatprep.subr.mxu1 %v9360_v0 }
 0x146   : > { %9077 = vmatpush3.msra.mxu1 %v7291_v31  ;;  %9078 = vmatprep.mubr.msk.f32.mxu1 %vm9362_vm0, %v9360_v0  ;;  %v4024_v41 = vsub.f32 %v10085_v38, %v4023_v42 }
 0x147   : > { %9081 = vmatprep.subr.mxu1 %v9360_v0 }
 0x148   : > { %v4025_v54 = vand.u32 4294901760, %v4024_v41 }
 0x149   : > { %9079 = vmatmul.mubr.f32.vlgmr.msra.gmra.mrb[86].mxu1 %v10026_v45 }
 0x14a   : > { %3394 = vmatmul.mubr.f32.vlgmr.msra.gmra.mrb[0].mxu0 %v9708_v32  ;;  %9082 = vmatpush3.msra.mxu1 %v10045_v6 }
 0x14b   : > { %3403 = vmatpush1.msra.mxu0 %v9948_v51  ;;  %3466 = vmatprep.mubr.f32.mxu0 %v9360_v0  ;;  %v8222_v51 = vsub.f32 %v7677_v49, %v10110_v26 }
 0x14c   : > { %3944 = vmatprep.subr.mxu0 %v10071_v29  ;;  %9083 = vmatprep.mubr.msk.f32.mxu1 %vm9362_vm0, %v9360_v0 }
 0x14d   : > { %9084 = vmatmul.mubr.f32.vlgmr.msra.gmra.mrb[88].mxu1 %v10039_v20  ;;  %9086 = vmatprep.subr.mxu1 %v9360_v0  ;;  %v8223_v13 = vand.u32 4294901760, %v8222_v51 }
 0x14e   : > { %9087 = vmatpush3.msra.mxu1 %v10029_v18  ;;  %9088 = vmatprep.mubr.msk.f32.mxu1 %vm9362_vm0, %v9360_v0 }
 0x14f   : > { %9091 = vmatprep.subr.mxu1 %v9360_v0  ;;  %v8224_v53 = vsub.f32 %v8222_v51, %v8223_v13 }
 0x151   : > { %9089 = vmatmul.mubr.f32.vlgmr.msra.gmra.mrb[90].mxu1 %v10050_v22  ;;  %v8225_v63 = vand.u32 4294901760, %v8224_v53 }
 0x152   : > { %3468 = vmatmul.mubr.f32.vlgmr.msra.gmra.mrb[0].mxu0 %v9708_v32  ;;  %9092 = vmatpush3.msra.mxu1 %v7289_v23  ;;  %v7749_v32 = vsub.f32 %v10126_v19, %v10136_v58  ;;  %v4962_v23 = vsub.f32 %v4871_v46, %v10210_v9 }
 0x153   : > { %3946 = vmatpush1.msra.mxu0 %v10099_v44  ;;  %4009 = vmatprep.mubr.f32.mxu0 %v9360_v0 }
 0x154   : > { %4026 = vmatprep.subr.mxu0 %v4025_v54  ;;  %9093 = vmatprep.mubr.msk.f32.mxu1 %vm9362_vm0, %v9360_v0  ;;  %v10155_v57 = vand.u32 4294901760, %v7749_v32  ;;  %v4963_v31 = vand.u32 4294901760, %v4962_v23 }
 0x155   : > { %9094 = vmatmul.mubr.f32.vlgmr.msra.gmra.mrb[92].mxu1 %v10026_v45  ;;  %9096 = vmatprep.subr.mxu1 %v9360_v0 }
 0x156   : > { %9097 = vmatpush3.msra.mxu1 %v10029_v18  ;;  %9098 = vmatprep.mubr.msk.f32.mxu1 %vm9362_vm0, %v9360_v0 }
 0x157   : > { %9101 = vmatprep.subr.mxu1 %v9360_v0 }
 0x159   : > { %9099 = vmatmul.mubr.f32.vlgmr.msra.gmra.mrb[94].mxu1 %v10026_v45 }
 0x15a   : > { %4015 = vmatmul.mubr.f32.vlgmr.msra.gmra.mrb[0].mxu0 %v9853_v21  ;;  %9102 = vmatpush3.msra.mxu1 %v10110_v26  ;;  %v8593_v21 = vld [vmem:[%s10387_s2] sm:$0xff] }
 0x15b   : > { %4032 = vmatpush1.msra.mxu0 %v4031_v59  ;;  %4095 = vmatprep.mubr.f32.mxu0 %v9360_v0 }
 0x15c   : > { %4105 = vmatprep.subr.mxu0 %v10085_v38  ;;  %9103 = vmatprep.mubr.msk.f32.mxu1 %vm9362_vm0, %v9360_v0 }
 0x15d   : > { %9104 = vmatmul.mubr.f32.vlgmr.msra.gmra.mrb[96].mxu1 %v10155_v57  ;;  %9106 = vmatprep.subr.mxu1 %v9360_v0 }
 0x15e   : > { %9107 = vmatpush3.msra.mxu1 %v8225_v63  ;;  %9108 = vmatprep.mubr.msk.f32.mxu1 %vm9362_vm0, %v9360_v0 }
 0x15f   : > { %9111 = vmatprep.subr.mxu1 %v9360_v0  ;;  %8596 = vperm.xlu0 %9290, %v8593_v21  }
 0x161   : > { %9109 = vmatmul.mubr.f32.vlgmr.msra.gmra.mrb[98].mxu1 %v10106_v50 }
 0x162   : > { %4097 = vmatmul.mubr.f32.vlgmr.msra.gmra.mrb[0].mxu0 %v9800_v62  ;;  %9112 = vmatpush3.msra.mxu1 %v8222_v51 }
 0x163   : > { %4108 = vmatpush1.msra.mxu0 %v10113_v34  ;;  %4171 = vmatprep.mubr.f32.mxu0 %v9360_v0 }
 0x164   : > { %4181 = vmatprep.subr.mxu0 %v10071_v29  ;;  %9113 = vmatprep.mubr.msk.f32.mxu1 %vm9362_vm0, %v9360_v0 }
 0x165   : > { %9114 = vmatmul.mubr.f32.vlgmr.msra.gmra.mrb[100].mxu1 %v10126_v19  ;;  %9116 = vmatprep.subr.mxu1 %v9360_v0 }
 0x166   : > { %9117 = vmatpush3.msra.mxu1 %v10110_v26  ;;  %9118 = vmatprep.mubr.msk.f32.mxu1 %vm9362_vm0, %v9360_v0 }
 0x167   : > { %9121 = vmatprep.subr.mxu1 %v9360_v0 }
 0x169   : > { %9119 = vmatmul.mubr.f32.vlgmr.msra.gmra.mrb[102].mxu1 %v10136_v58 }
 0x16a   : > { %4174 = vmatmul.mubr.f32.vlgmr.msra.gmra.mrb[0].mxu0 %v9820_v4  ;;  %9122 = vmatpush3.msra.mxu1 %v8223_v13  ;;  %v10199_v4 = vand.u32 4294901760, %v4873_v5 }
 0x16b   : > { %4183 = vmatpush1.msra.mxu0 %v10099_v44  ;;  %4246 = vmatprep.mubr.f32.mxu0 %v9360_v0  ;;  %v761_v3 = vpop.f32.mrb[0].mxu1 }
 0x16c   : > { %4259 = vmatprep.subr.mxu0 %v4023_v42  ;;  %9123 = vmatprep.mubr.msk.f32.mxu1 %vm9362_vm0, %v9360_v0  ;;  %v4956_v14 = vsub.f32 %v4873_v5, %v10199_v4  ;;  %v8865_v8 = vpop.f32.mrb[1].mxu1 }
 0x16d   : > { %9124 = vmatmul.mubr.f32.vlgmr.msra.gmra.mrb[104].mxu1 %v10106_v50  ;;  %9126 = vmatprep.subr.mxu1 %v9360_v0 }
 0x16e   : > { %9127 = vmatpush3.msra.mxu1 %v10110_v26  ;;  %9128 = vmatprep.mubr.msk.f32.mxu1 %vm9362_vm0, %v9360_v0  ;;  %v4957_v17 = vand.u32 4294901760, %v4956_v14 }
 0x170   : > { %v4958_v15 = vsub.f32 %v4956_v14, %v4957_v17 }
 0x171   : > { %9129 = vmatmul.mubr.f32.vlgmr.msra.gmra.mrb[106].mxu1 %v10106_v50 }
 0x172   : > { %4250 = vmatmul.mubr.f32.vlgmr.msra.gmra.mrb[0].mxu0 %v9834_v11  ;;  %v4959_v35 = vand.u32 4294901760, %v4958_v15 }
 0x173   : > { %4263 = vmatpush1.msra.mxu0 %v4029_v52  ;;  %4326 = vmatprep.mubr.f32.mxu0 %v9360_v0  ;;  %v837_v55 = vpop.f32.mrb[2].mxu1 }
 0x174   : > { %4335 = vmatprep.subr.mxu0 %v10071_v29  ;;  %v8870_v18 = vpop.f32.mrb[3].mxu1  ;;  %v838_v24 = vadd.f32 %v837_v55, %v761_v3  ;;  %v5807_v3 = vsel %vm217_vm3, %v9719_v37, 0 }
 0x175   : > { %v10230_v18 = vand.u32 4294901760, %v5807_v3 }
 0x178   : > { %v911_v11 = vpop.f32.mrb[4].mxu1 }
 0x179   : > { %v8875_v6 = vpop.f32.mrb[5].mxu1  ;;  %v912_v29 = vadd.f32 %v911_v11, %v838_v24 }
 0x17a   : > { %4328 = vmatmul.mubr.f32.vlgmr.msra.gmra.mrb[0].mxu0 %v9800_v62 }
 0x17b   : > { %4337 = vmatpush1.msra.mxu0 %v10099_v44  ;;  %4400 = vmatprep.mubr.f32.mxu0 %v9360_v0  ;;  %v4964_v44 = vsub.f32 %v4962_v23, %v4963_v31 }
 0x17c   : > { %4878 = vmatprep.subr.mxu0 %v10199_v4  ;;  %v985_v40 = vpop.f32.mrb[6].mxu1 }
 0x17d   : > { %v8880_v28 = vpop.f32.mrb[7].mxu1  ;;  %v986_v38 = vadd.f32 %v985_v40, %v912_v29  ;;  %v4965_v41 = vand.u32 4294901760, %v4964_v44 }
 0x180   : > { %v1059_v33 = vpop.f32.mrb[8].mxu1 }
 0x181   : > { %v8885_v12 = vpop.f32.mrb[9].mxu1  ;;  %v1060_v49 = vadd.f32 %v1059_v33, %v986_v38 }
 0x182   : > { %4402 = vmatmul.mubr.f32.vlgmr.msra.gmra.mrb[0].mxu0 %v9800_v62 }
 0x183   : > { %4880 = vmatpush1.msra.mxu0 %v10210_v9  ;;  %4943 = vmatprep.mubr.f32.mxu0 %v9360_v0 }
 0x184   : > { %4960 = vmatprep.subr.mxu0 %v4959_v35  ;;  %v1131_v42 = vpop.f32.mrb[10].mxu1 }
 0x185   : > { %v1132_v26 = vadd.f32 %v1131_v42, %v1060_v49  ;;  %v8890_v34 = vpop.f32.mrb[11].mxu1 }
 0x188   : > { %v1681_v51 = vpop.f32.mrb[12].mxu1 }
 0x189   : > { %v1682_v52 = vadd.f32 %v1681_v51, %v1132_v26  ;;  %v8895_v54 = vpop.f32.mrb[13].mxu1 }
 0x18a   : > { %4949 = vmatmul.mubr.f32.vlgmr.msra.gmra.mrb[0].mxu0 %v9926_v47 }
 0x18b   : > { %4966 = vmatpush1.msra.mxu0 %v4965_v41  ;;  %5029 = vmatprep.mubr.f32.mxu0 %v9360_v0 }
 0x18c   : > { %5039 = vmatprep.subr.mxu0 %v4956_v14  ;;  %v1757_v62 = vpop.f32.mrb[14].mxu1 }
 0x18d   : > { %v1758_v13 = vadd.f32 %v1757_v62, %v1682_v52  ;;  %v8900_v36 = vpop.f32.mrb[15].mxu1 }
 0x190   : > { %v1831_v32 = vpop.f32.mrb[16].mxu1 }
 0x191   : > { %v1832_v53 = vadd.f32 %v1831_v32, %v1758_v13  ;;  %v8905_v59 = vpop.f32.mrb[17].mxu1 }
 0x192   : > { %5031 = vmatmul.mubr.f32.vlgmr.msra.gmra.mrb[0].mxu0 %v9873_v25 }
 0x193   : > { %5042 = vmatpush1.msra.mxu0 %v4962_v23  ;;  %5105 = vmatprep.mubr.f32.mxu0 %v9360_v0 }
 0x194   : > { %5115 = vmatprep.subr.mxu0 %v10199_v4  ;;  %v1905_v63 = vpop.f32.mrb[18].mxu1 }
 0x195   : > { %v1906_v21 = vadd.f32 %v1905_v63, %v1832_v53  ;;  %v8910_v47 = vpop.f32.mrb[19].mxu1 }
 0x198   : > { %v1979_v1 = vpop.f32.mrb[20].mxu1 }
 0x199   : > { %v1980_v5 = vadd.f32 %v1979_v1, %v1906_v21  ;;  %v8915_v46 = vpop.f32.mrb[21].mxu1 }
 0x19a   : > { %5108 = vmatmul.mubr.f32.vlgmr.msra.gmra.mrb[0].mxu0 %v9886_v10  ;;  %v5890_v10 = vsub.f32 %v5807_v3, %v10230_v18  ;;  %v6735_v46 = vsel %vm6733_vm8, %v9796_v60, %v10015_v16 }
 0x19b   : > { %5117 = vmatpush1.msra.mxu0 %v10210_v9  ;;  %5180 = vmatprep.mubr.f32.mxu0 %v9360_v0  ;;  %v6741_v3 = vsel %vm217_vm3, %v6735_v46, 0 }
 0x19c   : > { %5193 = vmatprep.subr.mxu0 %v4957_v17  ;;  %v2051_v14 = vpop.f32.mrb[22].mxu1  ;;  %v5805_v17 = vsel %vm217_vm3, %v9724_v39, 0  ;;  %v5891_v40 = vand.u32 4294901760, %v5890_v10 }
 0x19d   : > { %v2052_v8 = vadd.f32 %v2051_v14, %v1980_v5  ;;  %v8920_v55 = vpop.f32.mrb[23].mxu1  ;;  %v10238_v24 = vand.u32 4294901760, %v5805_v17 }
 0x19e   : > { %v5892_v39 = vsub.f32 %v5890_v10, %v5891_v40 }
 0x1a0   : > { %v2612_v11 = vpop.f32.mrb[24].mxu1  ;;  %v5893_v12 = vand.u32 4294901760, %v5892_v39 }
 0x1a1   : > { %v8925_v6 = vpop.f32.mrb[25].mxu1 }
 0x1a2   : > { %5184 = vmatmul.mubr.f32.vlgmr.msra.gmra.mrb[0].mxu0 %v9897_v30  ;;  %v5896_v30 = vsub.f32 %v5805_v17, %v10238_v24  ;;  %v10260_v6 = vand.u32 4294901760, %v6741_v3 }
 0x1a3   : > { %5197 = vmatpush1.msra.mxu0 %v4963_v31  ;;  %5260 = vmatprep.mubr.f32.mxu0 %v9360_v0 }
 0x1a4   : > { %5269 = vmatprep.subr.mxu0 %v10199_v4  ;;  %v2688_v23 = vpop.f32.mrb[26].mxu1  ;;  %v5897_v33 = vand.u32 4294901760, %v5896_v30  ;;  %v10265_v60 = vsub.f32 %v6741_v3, %v10260_v6 }
 0x1a5   : > { %v2689_v37 = vadd.f32 %v2688_v23, %v2612_v11  ;;  %v8930_v15 = vpop.f32.mrb[27].mxu1 }
 0x1a8   : > { %v2762_v28 = vpop.f32.mrb[28].mxu1 }
 0x1a9   : > { %v2763_v29 = vadd.f32 %v2762_v28, %v2689_v37  ;;  %v8935_v35 = vpop.f32.mrb[29].mxu1 }
 0x1aa   : > { %5262 = vmatmul.mubr.f32.vlgmr.msra.gmra.mrb[0].mxu0 %v9873_v25 }
 0x1ab   : > { %5271 = vmatpush1.msra.mxu0 %v10210_v9  ;;  %5334 = vmatprep.mubr.f32.mxu0 %v9360_v0  ;;  %v5898_v9 = vsub.f32 %v5896_v30, %v5897_v33 }
 0x1ac   : > { %5812 = vmatprep.subr.mxu0 %v10230_v18  ;;  %v2836_v4 = vpop.f32.mrb[30].mxu1 }
 0x1ad   : > { %v2837_v31 = vadd.f32 %v2836_v4, %v2763_v29  ;;  %v8940_v38 = vpop.f32.mrb[31].mxu1  ;;  %v5899_v51 = vand.u32 4294901760, %v5898_v9 }
 0x1b0   : > { %v2910_v49 = vpop.f32.mrb[32].mxu1 }
 0x1b1   : > { %v2911_v44 = vadd.f32 %v2910_v49, %v2837_v31  ;;  %v8945_v42 = vpop.f32.mrb[33].mxu1 }
 0x1b2   : > { %5336 = vmatmul.mubr.f32.vlgmr.msra.gmra.mrb[0].mxu0 %v9873_v25 }
 0x1b3   : > { %5814 = vmatpush1.msra.mxu0 %v10238_v24  ;;  %5877 = vmatprep.mubr.f32.mxu0 %v9360_v0 }
 0x1b4   : > { %5894 = vmatprep.subr.mxu0 %v5893_v12  ;;  %v2982_v26 = vpop.f32.mrb[34].mxu1 }
 0x1b5   : > { %v2983_v34 = vadd.f32 %v2982_v26, %v2911_v44  ;;  %v8950_v41 = vpop.f32.mrb[35].mxu1 }
 0x1b7   : > { %v2988_v52 = vadd.f32 %v2983_v34, %v2052_v8 }
 0x1b8   : > { %v3546_v54 = vpop.f32.mrb[36].mxu1 }
 0x1b9   : > { %v8955_v62 = vpop.f32.mrb[37].mxu1 }
 0x1ba   : > { %5883 = vmatmul.mubr.f32.vlgmr.msra.gmra.mrb[0].mxu0 %v10004_v7 }
 0x1bb   : > { %5900 = vmatpush1.msra.mxu0 %v5899_v51  ;;  %5963 = vmatprep.mubr.f32.mxu0 %v9360_v0 }
 0x1bc   : > { %5973 = vmatprep.subr.mxu0 %v5890_v10  ;;  %v3622_v25 = vpop.f32.mrb[38].mxu1 }
 0x1bd   : > { %v3623_v13 = vadd.f32 %v3622_v25, %v3546_v54  ;;  %v8960_v36 = vpop.f32.mrb[39].mxu1 }
 0x1c0   : > { %v3696_v32 = vpop.f32.mrb[40].mxu1 }
 0x1c1   : > { %v3697_v53 = vadd.f32 %v3696_v32, %v3623_v13  ;;  %v8965_v59 = vpop.f32.mrb[41].mxu1  ;;  %v7664_v32 = vpop.permute.xlu1 %7663 }
 0x1c2   : > { %5965 = vmatmul.mubr.f32.vlgmr.msra.gmra.mrb[0].mxu0 %v9955_v56 }
 0x1c3   : > { %5976 = vmatpush1.msra.mxu0 %v5896_v30  ;;  %6039 = vmatprep.mubr.f32.mxu0 %v9360_v0 }
 0x1c4   : > { %6049 = vmatprep.subr.mxu0 %v10230_v18  ;;  %v3770_v63 = vpop.f32.mrb[42].mxu1 }
 0x1c5   : > { %v3771_v21 = vadd.f32 %v3770_v63, %v3697_v53  ;;  %v8970_v7 = vpop.f32.mrb[43].mxu1  ;;  %v7662_v46 = vpop.permute.xlu1 %7661 }
 0x1c8   : > { %v3844_v47 = vpop.f32.mrb[44].mxu1 }
 0x1c9   : > { %v3845_v1 = vadd.f32 %v3844_v47, %v3771_v21  ;;  %v8975_v5 = vpop.f32.mrb[45].mxu1  ;;  %v7669_v21 = vsel %vm7667_vm10, %v7664_v32, %v10092_v43 }
 0x1ca   : > { %6042 = vmatmul.mubr.f32.vlgmr.msra.gmra.mrb[0].mxu0 %v9975_v27  ;;  %v6739_v27 = vsel %vm217_vm3, %v9824_v2, 0  ;;  %v7675_v47 = vsel %vm217_vm3, %v7669_v21, 0 }
 0x1cb   : > { %6051 = vmatpush1.msra.mxu0 %v10238_v24  ;;  %6114 = vmatprep.mubr.f32.mxu0 %v9360_v0  ;;  %v10270_v15 = vand.u32 4294901760, %v6739_v27  ;;  %v10299_v3 = vand.u32 4294901760, %v7675_v47 }
 0x1cc   : > { %6127 = vmatprep.subr.mxu0 %v5891_v40  ;;  %v3916_v14 = vpop.f32.mrb[46].mxu1  ;;  %v6825_v40 = vand.u32 4294901760, %v10265_v60 }
 0x1cd   : > { %v3917_v8 = vadd.f32 %v3916_v14, %v3845_v1  ;;  %v8980_v55 = vpop.f32.mrb[47].mxu1  ;;  %v10275_v35 = vsub.f32 %v6739_v27, %v10270_v15  ;;  %v7758_v43 = vsub.f32 %v7675_v47, %v10299_v3 }
 0x1ce   : > { %v6826_v2 = vsub.f32 %v10265_v60, %v6825_v40 }
 0x1cf   : > { %v3922_v11 = vadd.f32 %v3917_v8, %v2988_v52  ;;  %v6831_v4 = vand.u32 4294901760, %v10275_v35 }
 0x1d0   : > { %v4480_v10 = vpop.f32.mrb[48].mxu1  ;;  %v6827_v31 = vand.u32 4294901760, %v6826_v2 }
 0x1d1   : > { %v8985_v17 = vpop.f32.mrb[49].mxu1 }
 0x1d2   : > { %6118 = vmatmul.mubr.f32.vlgmr.msra.gmra.mrb[0].mxu0 %v9985_v61 }
 0x1d3   : > { %6131 = vmatpush1.msra.mxu0 %v5897_v33  ;;  %6194 = vmatprep.mubr.f32.mxu0 %v9360_v0 }
 0x1d4   : > { %6203 = vmatprep.subr.mxu0 %v10230_v18  ;;  %v4556_v16 = vpop.f32.mrb[50].mxu1 }
 0x1d5   : > { %v4557_v23 = vadd.f32 %v4556_v16, %v4480_v10  ;;  %v8990_v37 = vpop.f32.mrb[51].mxu1  ;;  %v7759_v16 = vand.u32 4294901760, %v7758_v43 }
 0x1d8   : > { %v4630_v28 = vpop.f32.mrb[52].mxu1 }
 0x1d9   : > { %v4631_v61 = vadd.f32 %v4630_v28, %v4557_v23  ;;  %v8995_v29 = vpop.f32.mrb[53].mxu1 }
 0x1da   : > { %6196 = vmatmul.mubr.f32.vlgmr.msra.gmra.mrb[0].mxu0 %v9955_v56 }
 0x1db   : > { %6205 = vmatpush1.msra.mxu0 %v10238_v24  ;;  %6268 = vmatprep.mubr.f32.mxu0 %v9360_v0  ;;  %v6832_v24 = vsub.f32 %v10275_v35, %v6831_v4 }
 0x1dc   : > { %6746 = vmatprep.subr.mxu0 %v10260_v6  ;;  %v4704_v18 = vpop.f32.mrb[54].mxu1 }
 0x1dd   : > { %v4705_v30 = vadd.f32 %v4704_v18, %v4631_v61  ;;  %v9000_v39 = vpop.f32.mrb[55].mxu1  ;;  %v6833_v9 = vand.u32 4294901760, %v6832_v24 }
 0x1e0   : > { %v4778_v38 = vpop.f32.mrb[56].mxu1 }
 0x1e1   : > { %v4779_v33 = vadd.f32 %v4778_v38, %v4705_v30  ;;  %v9005_v12 = vpop.f32.mrb[57].mxu1 }
 0x1e2   : > { %6270 = vmatmul.mubr.f32.vlgmr.msra.gmra.mrb[0].mxu0 %v9955_v56 }
 0x1e3   : > { %6748 = vmatpush1.msra.mxu0 %v10270_v15  ;;  %6811 = vmatprep.mubr.f32.mxu0 %v9360_v0 }
 0x1e4   : > { %6828 = vmatprep.subr.mxu0 %v6827_v31  ;;  %v4850_v49 = vpop.f32.mrb[58].mxu1 }
 0x1e5   : > { %v4851_v44 = vadd.f32 %v4850_v49, %v4779_v33  ;;  %v9010_v42 = vpop.f32.mrb[59].mxu1 }
 0x1e7   : > { %v4856_v26 = vadd.f32 %v4851_v44, %v3922_v11 }
 0x1e8   : > { %v5414_v34 = vpop.f32.mrb[60].mxu1 }
 0x1e9   : > { %v9015_v41 = vpop.f32.mrb[61].mxu1 }
 0x1ea   : > { %6817 = vmatmul.mubr.f32.vlgmr.msra.gmra.mrb[0].mxu0 %v10074_v48 }
 0x1eb   : > { %6834 = vmatpush1.msra.mxu0 %v6833_v9  ;;  %6897 = vmatprep.mubr.f32.mxu0 %v9360_v0 }
 0x1ec   : > { %6907 = vmatprep.subr.mxu0 %v10265_v60  ;;  %v5490_v56 = vpop.f32.mrb[62].mxu1 }
 0x1ed   : > { %v5491_v51 = vadd.f32 %v5490_v56, %v5414_v34  ;;  %v9020_v52 = vpop.f32.mrb[63].mxu1 }
 0x1f0   : > { %v5564_v54 = vpop.f32.mrb[64].mxu1 }
 0x1f1   : > { %v5565_v62 = vadd.f32 %v5564_v54, %v5491_v51  ;;  %v9025_v25 = vpop.f32.mrb[65].mxu1 }
 0x1f2   : > { %6899 = vmatmul.mubr.f32.vlgmr.msra.gmra.mrb[0].mxu0 %v10026_v45 }
 0x1f3   : > { %6910 = vmatpush1.msra.mxu0 %v10275_v35  ;;  %6973 = vmatprep.mubr.f32.mxu0 %v9360_v0 }
 0x1f4   : > { %6983 = vmatprep.subr.mxu0 %v10260_v6  ;;  %v5638_v48 = vpop.f32.mrb[66].mxu1 }
 0x1f5   : > { %v5639_v13 = vadd.f32 %v5638_v48, %v5565_v62  ;;  %v9030_v36 = vpop.f32.mrb[67].mxu1 }
 0x1f8   : > { %v5712_v53 = vpop.f32.mrb[68].mxu1 }
 0x1f9   : > { %v5713_v59 = vadd.f32 %v5712_v53, %v5639_v13  ;;  %v9035_v63 = vpop.f32.mrb[69].mxu1 }
 0x1fa   : > { %6976 = vmatmul.mubr.f32.vlgmr.msra.gmra.mrb[0].mxu0 %v10039_v20  ;;  %v7668_v20 = vsel %vm7667_vm10, %v7662_v46, %v7664_v32 }
 0x1fb   : > { %6985 = vmatpush1.msra.mxu0 %v10270_v15  ;;  %7048 = vmatprep.mubr.f32.mxu0 %v9360_v0  ;;  %v7673_v11 = vsel %vm217_vm3, %v7668_v20, 0 }
 0x1fc   : > { %7061 = vmatprep.subr.mxu0 %v6825_v40  ;;  %v5784_v7 = vpop.f32.mrb[70].mxu1  ;;  %v10307_v27 = vand.u32 4294901760, %v7673_v11 }
 0x1fd   : > { %v5785_v1 = vadd.f32 %v5784_v7, %v5713_v59  ;;  %v9040_v5 = vpop.f32.mrb[71].mxu1 }
 0x1ff   : > { %v5790_v14 = vadd.f32 %v5785_v1, %v4856_v26 }
 0x200   : > { %v6348_v8 = vpop.f32.mrb[72].mxu1 }
 0x201   : > { %v9045_v55 = vpop.f32.mrb[73].mxu1 }
 0x202   : > { %7052 = vmatmul.mubr.f32.vlgmr.msra.gmra.mrb[0].mxu0 %v10050_v22  ;;  %v7764_v22 = vsub.f32 %v7673_v11, %v10307_v27 }
 0x203   : > { %7065 = vmatpush1.msra.mxu0 %v6831_v4  ;;  %7128 = vmatprep.mubr.f32.mxu0 %v9360_v0 }
 0x204   : > { %7137 = vmatprep.subr.mxu0 %v10260_v6  ;;  %v6424_v10 = vpop.f32.mrb[74].mxu1  ;;  %v7760_v6 = vsub.f32 %v7758_v43, %v7759_v16  ;;  %v7765_v35 = vand.u32 4294901760, %v7764_v22 }
 0x205   : > { %v6425_v17 = vadd.f32 %v6424_v10, %v6348_v8  ;;  %v9050_v60 = vpop.f32.mrb[75].mxu1 }
 0x206   : > { %v7761_v2 = vand.u32 4294901760, %v7760_v6 }
 0x208   : > { %v6498_v23 = vpop.f32.mrb[76].mxu1 }
 0x209   : > { %v6499_v37 = vadd.f32 %v6498_v23, %v6425_v17  ;;  %v9055_v40 = vpop.f32.mrb[77].mxu1  ;;  %v8597_v17 = vpop.permute.xlu0 %8596 }
 0x20a   : > { %7130 = vmatmul.mubr.f32.vlgmr.msra.gmra.mrb[0].mxu0 %v10026_v45 }
 0x20b   : > { %7139 = vmatpush1.msra.mxu0 %v10270_v15  ;;  %7202 = vmatprep.mubr.f32.mxu0 %v9360_v0  ;;  %v7766_v15 = vsub.f32 %v7764_v22, %v7765_v35 }
 0x20c   : > { %7680 = vmatprep.subr.mxu0 %v10299_v3  ;;  %v6572_v28 = vpop.f32.mrb[78].mxu1 }
 0x20d   : > { %v6573_v61 = vadd.f32 %v6572_v28, %v6499_v37  ;;  %v9060_v29 = vpop.f32.mrb[79].mxu1  ;;  %v7767_v33 = vand.u32 4294901760, %v7766_v15 }
 0x210   : > { %v6646_v18 = vpop.f32.mrb[80].mxu1 }
 0x211   : > { %v6647_v30 = vadd.f32 %v6646_v18, %v6573_v61  ;;  %v9065_v39 = vpop.f32.mrb[81].mxu1 }
 0x212   : > { %7204 = vmatmul.mubr.f32.vlgmr.msra.gmra.mrb[0].mxu0 %v10026_v45 }
 0x213   : > { %7682 = vmatpush1.msra.mxu0 %v10307_v27  ;;  %7745 = vmatprep.mubr.f32.mxu0 %v9360_v0 }
 0x214   : > { %7762 = vmatprep.subr.mxu0 %v7761_v2  ;;  %v6718_v4 = vpop.f32.mrb[82].mxu1 }
 0x215   : > { %v6719_v31 = vadd.f32 %v6718_v4, %v6647_v30  ;;  %v9070_v38 = vpop.f32.mrb[83].mxu1 }
 0x217   : > { %v6724_v12 = vadd.f32 %v6719_v31, %v5790_v14 }
 0x218   : > { %v7282_v24 = vpop.f32.mrb[84].mxu1 }
 0x219   : > { %v9075_v49 = vpop.f32.mrb[85].mxu1 }
 0x21a   : > { %7751 = vmatmul.mubr.f32.vlgmr.msra.gmra.mrb[0].mxu0 %v10155_v57 }
 0x21b   : > { %7768 = vmatpush1.msra.mxu0 %v7767_v33  ;;  %7831 = vmatprep.mubr.f32.mxu0 %v9360_v0 }
 0x21c   : > { %7841 = vmatprep.subr.mxu0 %v7758_v43  ;;  %v7358_v45 = vpop.f32.mrb[86].mxu1  ;;  %v8604_v43 = vlaneseq }
 0x21d   : > { %v7359_v44 = vadd.f32 %v7358_v45, %v7282_v24  ;;  %v9080_v42 = vpop.f32.mrb[87].mxu1 }
 0x21e   : > { %v8605_v11 = vshrl.u32 %v8604_v43, 7 }
 0x220   : > { %v7432_v9 = vpop.f32.mrb[88].mxu1  ;;  %v8614_v10 = vsub.s32 2, %v8605_v11  ;;  %v8606_v60 = vsub.s32 0, %v8605_v11 }
 0x221   : > { %v7433_v26 = vadd.f32 %v7432_v9, %v7359_v44  ;;  %v9085_v34 = vpop.f32.mrb[89].mxu1 }
 0x222   : > { %7833 = vmatmul.mubr.f32.vlgmr.msra.gmra.mrb[0].mxu0 %v10106_v50 }
 0x223   : > { %7844 = vmatpush1.msra.mxu0 %v7764_v22  ;;  %7907 = vmatprep.mubr.f32.mxu0 %v9360_v0 }
 0x224   : > { %7917 = vmatprep.subr.mxu0 %v10299_v3  ;;  %v7506_v41 = vpop.f32.mrb[90].mxu1 }
 0x225   : > { %v7507_v56 = vadd.f32 %v7506_v41, %v7433_v26  ;;  %v9090_v57 = vpop.f32.mrb[91].mxu1 }
 0x228   : > { %v7580_v51 = vpop.f32.mrb[92].mxu1 }
 0x229   : > { %v7581_v52 = vadd.f32 %v7580_v51, %v7507_v56  ;;  %v9095_v54 = vpop.f32.mrb[93].mxu1 }
 0x22a   : > { %7910 = vmatmul.mubr.f32.vlgmr.msra.gmra.mrb[0].mxu0 %v10126_v19 }
 0x22b   : > { %7919 = vmatpush1.msra.mxu0 %v10307_v27  ;;  %7982 = vmatprep.mubr.f32.mxu0 %v9360_v0 }
 0x22c   : > { %7995 = vmatprep.subr.mxu0 %v7759_v16  ;;  %v7652_v62 = vpop.f32.mrb[94].mxu1 }
 0x22d   : > { %v7653_v25 = vadd.f32 %v7652_v62, %v7581_v52  ;;  %v9100_v48 = vpop.f32.mrb[95].mxu1 }
 0x22f   : > { %v7658_v13 = vadd.f32 %v7653_v25, %v6724_v12 }
 0x230   : > { %v8216_v36 = vpop.f32.mrb[96].mxu1 }
 0x231   : > { %v9105_v32 = vpop.f32.mrb[97].mxu1 }
 0x232   : > { %7986 = vmatmul.mubr.f32.vlgmr.msra.gmra.mrb[0].mxu0 %v10136_v58 }
 0x233   : > { %7999 = vmatpush1.msra.mxu0 %v7765_v35  ;;  %8062 = vmatprep.mubr.f32.mxu0 %v9360_v0 }
 0x234   : > { %8071 = vmatprep.subr.mxu0 %v10299_v3  ;;  %v8292_v53 = vpop.f32.mrb[98].mxu1 }
 0x235   : > { %v8293_v19 = vadd.f32 %v8292_v53, %v8216_v36  ;;  %v9110_v59 = vpop.f32.mrb[99].mxu1 }
 0x238   : > { %v8366_v63 = vpop.f32.mrb[100].mxu1 }
 0x239   : > { %v8367_v21 = vadd.f32 %v8366_v63, %v8293_v19  ;;  %v9115_v7 = vpop.f32.mrb[101].mxu1 }
 0x23a   : > { %8064 = vmatmul.mubr.f32.vlgmr.msra.gmra.mrb[0].mxu0 %v10106_v50 }
 0x23b   : > { %8073 = vmatpush1.msra.mxu0 %v10307_v27  ;;  %8136 = vmatprep.mubr.f32.mxu0 %v9360_v0  ;;  %v8602_v0 = vld [vmem:[%s10388_s3] sm:$0x7]  ;;  %v8610_v27 = vsub.s32 1, %v8605_v11 }
 0x23c   : > { %v8440_v47 = vpop.f32.mrb[102].mxu1  ;;  %v8615_v23 = vrot.slane %v8602_v0, %v8614_v10  ;;  %v8607_v37 = vrot.slane %v8602_v0, %v8606_v60 }
 0x23d   : > { %v8441_v1 = vadd.f32 %v8440_v47, %v8367_v21  ;;  %v9120_v58 = vpop.f32.mrb[103].mxu1  ;;  %v8611_v22 = vrot.slane %v8602_v0, %v8610_v27 }
 0x240   : > { %v8514_v5 = vpop.f32.mrb[104].mxu1 }
 0x241   : > { %v8515_v46 = vadd.f32 %v8514_v5, %v8441_v1  ;;  %v9125_v14 = vpop.f32.mrb[105].mxu1 }
 0x242   : > { %8138 = vmatmul.mubr.f32.vlgmr.msra.gmra.mrb[0].mxu0 %v10106_v50 }
 0x244   : > { %v8586_v3 = vpop.f32.mrb[106].mxu1 }
 0x245   : > { %v8587_v8 = vadd.f32 %v8586_v3, %v8515_v46  ;;  %v9130_v20 = vpop.f32.mrb[107].mxu1 }
 0x247   : > { %v8592_v55 = vadd.f32 %v8587_v8, %v7658_v13 }
 0x249   : > { %v8601_v16 = vadd.f32 %v8597_v17, %v8592_v55 }
 0x24b   : > { %v8621_v28 = vmul.f32 %v8615_v23, %v8601_v16 }
 0x24d   : > { %v8630_v18 = vmul.f32 %v8621_v28, %v8601_v16  ;;  %v8624_v15 = vsel %vm8623_vm11, %v8621_v28, 0.0 }
 0x24f   : > { %v8632_v38 = vsel %vm8623_vm11, %v8630_v18, 0.0 }
 0x315   : > { %v8139_v40 = vpop.f32.mrb[0].mxu0 }
 0x316   : > { %v8599_v50 = vadd.f32 %v8597_v17, %v8139_v40  ;;  %v8141_v6 = vpop.f32.mrb[1].mxu0 }
 0x317   : > { %v8600_v61 = vadd.f32 %v8597_v17, %v8141_v6 }
 0x318   : > { %v8619_v29 = vmul.f32 %v8607_v37, %v8599_v50 }
 0x319   : > { %v8620_v35 = vmul.f32 %v8611_v22, %v8600_v61 }
 0x31a   : > { %v8628_v2 = vmul.f32 %v8619_v29, %v8599_v50 }
 0x31b   : > { %v8629_v30 = vmul.f32 %v8620_v35, %v8600_v61  ;;  %v8622_v39 = vadd.f32 %v8620_v35, %v8619_v29 }
 0x31d   : > { %v8625_v4 = vadd.f32 %v8624_v15, %v8622_v39  ;;  %v8631_v31 = vadd.f32 %v8629_v30, %v8628_v2 }
 0x31f   : > { %8626 = vadd.xlane.f32.xlu1 %v8625_v4  ;;  %v8633_v33 = vadd.f32 %v8632_v38, %v8631_v31 }
 0x321   : > { %8634 = vadd.xlane.f32.xlu0 %v8633_v33 }
 0x3ac   : > { %v8627_v12 = vpop.xlane.xlu1 %8626 }
 0x3ad   : > { %v8636_v24 = vmul.f32 0.00390625, %v8627_v12 }
 0x3ae   : > { %v8635_v45 = vpop.xlane.xlu0 %8634 }
 0x3af   : > { %v8637_v49 = vmul.f32 %v8636_v24, %v8627_v12  ;;  %v8651_v52 = vsub.f32 %v8599_v50, %v8636_v24  ;;  %v8652_v54 = vsub.f32 %v8600_v61, %v8636_v24  ;;  %v8653_v62 = vsub.f32 %v8601_v16, %v8636_v24 }
 0x3b1   : > { %v8638_v44 = vsub.f32 %v8635_v45, %v8637_v49 }
 0x3b3   : > { %v8639_v42 = vmul.f32 0.003921569, %v8638_v44 }
 0x3b5   : > { %v8640_v9 = vmax.f32 %v8639_v42, 0.0 }
 0x3b7   : > { %9292 = vrsqrt.f32 %v8640_v9  ;;  %vm8643_vm12 = vcmp.eq.f32.partialorder %v8640_v9, inf  ;;  %v8646_v41 = vand.u32 2147483648, %v8640_v9  ;;  %vm8645_vm13 = vcmp.eq.f32.partialorder %v8640_v9, 0.0 }
 0x3c1   : > { %v9293_v26 = vpop.eup %9292 }
 0x3c2   : > { %v8642_v34 = vmul.f32 %v9293_v26, %v8640_v9 }
 0x3c4   : > { %v8644_v56 = vsel %vm8643_vm12, %v8640_v9, %v8642_v34 }
 0x3c5   : > { %v8647_v57 = vsel %vm8645_vm13, %v8646_v41, %v8644_v56 }
 0x3c6   : > { %v8648_v51 = vadd.f32 1e-05, %v8647_v57 }
 0x3c8   : > { %9294 = vrcp.f32 %v8648_v51 }
 0x3d2   : > { %v9295_v25 = vpop.eup %9294 }
 0x3d3   : > { %v8654_v48 = vmul.f32 %v9295_v25, %v8651_v52  ;;  %v8655_v13 = vmul.f32 %v9295_v25, %v8652_v54  ;;  %v8656_v36 = vmul.f32 %v9295_v25, %v8653_v62 }
 0x3d5   : > { %v8657_v32 = vmax.f32 %v8654_v48, 0.0  ;;  %v8658_v53 = vmax.f32 %v8655_v13, 0.0  ;;  %v8659_v19 = vmax.f32 %v8656_v36, 0.0 }
 0x3d7   : > { %8660 = vst [vmem:[%s190_s5] sm:$0xff] %v8657_v32  ;;  %8661 = vst [vmem:[%s190_s5 + $0x8] sm:$0xff] %v8658_v53 }
 0x3d8   : > { %8662 = vst.msk [vmem:[%s190_s5 + $0x10] sm:$0xff] %vm8623_vm11, %v8659_v19 }
 0x3d9   : > { %9309 = shalt.err (!%p9306_p3)
}
 0x3da   : > { %s9310_s14 = scalar_lea.hbm %s10342_s9, 384  ;;  %s9314_s23 = scalar_lea.hbm %s10389_s4, 768 }
 0x3db   : > { %p9311_p4 = scmp.ne.s32.totalorder %s10342_s9, %s9310_s14  ;;  %p9315_p9 = scmp.lt.u32.totalorder %s10342_s9, %s10389_s4 }
 0x3dc   : > { %p9316_p10 = scmp.lt.u32.totalorder %s9314_s23, %s9310_s14  ;;  %p9318_p12 = scmp.lt.u32.totalorder %s9310_s14, %s10342_s9 }
 0x3dd   : > { %p9312_p7 = pnand %p9311_p4, %p9435_p5 }
 0x3de   : > { %p9317_p11 = por %p9316_p10, %p9315_p9 }
 0x3df   : > { %p9313_p8 = pneg %p9312_p7 }
 0x3e0   : > { %p9319_p13 = por %p9318_p12, %p9317_p11 }
 0x3e2   : > { %p9320_p0 = pnand %p9319_p13, %p9313_p8 }
 0x3e4   : > { %9323 = shalt.err (!%p9320_p0)
}
 0x3e5   : > { %9240 = dma.vmem_to_hbm [thread:$0]  (%p9435_p5), %s10344_s6, 384, %s10342_s9, %s8664_s19  }
 0x3e6 PF: > { %p9246_p1 = scmp.ge.s32.totalorder %s9358_s18, 2  ;;  %s8690_s29 = sand.u32 1, %s9346_s15  }
 0x3e7   : > { %s8691_s30 = scalar_lea.sflag [#allocation3], %s8690_s29 }
 0x3e8   : > { %p9243_p2 = pnand %p9246_p1, %p9439_p6 }
 0x3ea   : > { %9341 = dma.done.wait (!%p9243_p2), %s8691_s30, 384  }
 0x3eb   : > { %9343 = vsyncadd (!%p9243_p2), %s8691_s30, 4294966912  ;;  %p14_p3 = scmp.ge.s32.totalorder %s9422_s21, 4   ;;  %s10392_s15 = smov %s9350_s16 }
 0x3ec   : > { %s10393_s16 = smov %s9354_s17  ;;  %s10394_s17 = smov %s9433_s24 }
 0x3ed   : > { %s10395_s18 = smov %s9422_s21  ;;  %16 = sbr.rel (!%p14_p3) target bundleno = 3 (0x3), region = 79 }
 0x3f4   :  { %8696 = vsyncpa [#allocation3], 1 }
 0x3f5   :  { %8698 = vsyncpa [#allocation3 + $0x1], 1 }

</bundles_post_ra>
